<compile_context>
chip_gen: v7x
topology: tpu7x:2x2x1
jax: 0.10.0
libtpu: 0.0.40
codegen_flags: <defaults>
</compile_context>

<pallas_src>
import functools

import jax
import jax.numpy as jnp
from jax.experimental import pallas as pl
from jax.experimental.pallas import tpu as pltpu


def _make_fused_attention_kernel(num_heads, head_dim, dim, scale):
    def kernel(x_ref, y_ref, wqkv_ref, bqkv_ref, wproj_ref, bproj_ref,
               ox_ref, oy_ref):
        # Per-batch token blocks: (N, C)
        tok_x = x_ref[0].astype(jnp.float32)
        tok_y = y_ref[0].astype(jnp.float32)

        wqkv = wqkv_ref[...].astype(jnp.float32)     # (C, 3C)  VMEM-resident
        bqkv = bqkv_ref[...].astype(jnp.float32)     # (1, 3C)
        bproj = bproj_ref[...].astype(jnp.float32)   # (1, C)

        # Fused QKV projection for both streams (MXU).
        qkv_x = jnp.dot(tok_x, wqkv, preferred_element_type=jnp.float32) + bqkv
        qkv_y = jnp.dot(tok_y, wqkv, preferred_element_type=jnp.float32) + bqkv

        def stream(qkv_self, qkv_other, residual, out_ref):
            # proj is linear, so accumulate per-head contributions directly:
            #   concat_h(o_h) @ Wproj == sum_h  o_h @ Wproj[h*hd:(h+1)*hd, :]
            # (avoids in-kernel reshape/transpose gymnastics entirely)
            acc = residual + bproj                                   # (N, C)
            for h in range(num_heads):
                lo = h * head_dim
                hi = lo + head_dim
                q = qkv_self[:, lo:hi]                               # (N, hd)
                k = qkv_self[:, dim + lo:dim + hi]                   # (N, hd)
                v = qkv_other[:, 2 * dim + lo:2 * dim + hi]          # (N, hd) cross-stream values
                s = jax.lax.dot_general(                             # q @ k^T
                    q, k, (((1,), (1,)), ((), ())),
                    preferred_element_type=jnp.float32) * scale      # (N, N)
                m = jnp.max(s, axis=-1, keepdims=True)
                p = jnp.exp(s - m)
                p = p / jnp.sum(p, axis=-1, keepdims=True)           # softmax
                oh = jnp.dot(p, v, preferred_element_type=jnp.float32)  # (N, hd)
                acc = acc + jnp.dot(
                    oh, wproj_ref[lo:hi, :].astype(jnp.float32),
                    preferred_element_type=jnp.float32)              # (N, C)
            out_ref[0] = acc.astype(out_ref.dtype)

        # x uses its own q/k but y's values; y is symmetric (per the spec).
        stream(qkv_x, qkv_y, tok_x, ox_ref)
        stream(qkv_y, qkv_x, tok_y, oy_ref)

    return kernel


@functools.partial(jax.jit, static_argnames=("num_heads", "scale"))
def self_attention_pallas(x, y, w_qkv, b_qkv, w_proj, b_proj, *, num_heads, scale):
    B, N, C = x.shape
    head_dim = C // num_heads
    kernel = _make_fused_attention_kernel(num_heads, head_dim, C, scale)

    b_qkv2 = b_qkv.reshape(1, 3 * C)
    b_proj2 = b_proj.reshape(1, C)

    grid_spec = pl.GridSpec(
        grid=(B,),
        in_specs=[
            pl.BlockSpec((1, N, C), lambda b: (b, 0, 0)),     # x tokens
            pl.BlockSpec((1, N, C), lambda b: (b, 0, 0)),     # y tokens
            pl.BlockSpec((C, 3 * C), lambda b: (0, 0)),       # W_qkv   (resident)
            pl.BlockSpec((1, 3 * C), lambda b: (0, 0)),       # b_qkv   (resident)
            pl.BlockSpec((C, C), lambda b: (0, 0)),           # W_proj  (resident)
            pl.BlockSpec((1, C), lambda b: (0, 0)),           # b_proj  (resident)
        ],
        out_specs=(
            pl.BlockSpec((1, N, C), lambda b: (b, 0, 0)),
            pl.BlockSpec((1, N, C), lambda b: (b, 0, 0)),
        ),
    )
    return pl.pallas_call(
        kernel,
        out_shape=(jax.ShapeDtypeStruct((B, N, C), x.dtype),
                   jax.ShapeDtypeStruct((B, N, C), y.dtype)),
        grid_spec=grid_spec,
        compiler_params=pltpu.CompilerParams(
            dimension_semantics=("parallel",)),
    )(x, y, w_qkv, b_qkv2, w_proj, b_proj2)


class SelfAttentionPallas:
    """JAX/Pallas equivalent of models/MCT/MCT.py::SelfAttention."""

    def __init__(self, dim, heads=8, qkv_bias=False, qk_scale=None,
                 dropout_rate=0.0, *, key, dtype=jnp.float32):
        assert dim % heads == 0
        self.dim = dim
        self.num_heads = heads
        head_dim = dim // heads
        self.scale = float(qk_scale) if qk_scale is not None else head_dim ** -0.5
        k1, k2, k3, k4 = jax.random.split(key, 4)
        s = 1.0 / (dim ** 0.5)
        self.w_qkv = jax.random.normal(k1, (dim, 3 * dim), dtype) * s
        self.b_qkv = (jax.random.normal(k2, (3 * dim,), dtype) * 0.1
                      if qkv_bias else jnp.zeros((3 * dim,), dtype))
        self.w_proj = jax.random.normal(k3, (dim, dim), dtype) * s
        self.b_proj = jax.random.normal(k4, (dim,), dtype) * 0.1
        # TODO(synk): dropout_rate > 0 not implemented (module default 0.0 ->
        # identity); nonzero rate would use pltpu.prng_seed / prng_random_bits.
        self.dropout_rate = dropout_rate
        self.out = {}

    def __call__(self, inputs):
        ox, oy = self_attention_pallas(
            inputs["x"], inputs["y"], self.w_qkv, self.b_qkv,
            self.w_proj, self.b_proj,
            num_heads=self.num_heads, scale=self.scale)
        self.out["x"], self.out["y"] = ox, oy
        return self.out


def _ref_forward(x, y, w_qkv, b_qkv, w_proj, b_proj, heads, scale):
    """Pure-JAX reference mirroring the PyTorch forward."""
    B, N, C = x.shape
    hd = C // heads
    hp = jax.lax.Precision.HIGHEST

    def split(t):
        qkv = jnp.einsum("bnc,cd->bnd", t, w_qkv, precision=hp) + b_qkv
        qkv = qkv.reshape(B, N, 3, heads, hd).transpose(2, 0, 3, 1, 4)
        return qkv[0], qkv[1], qkv[2]

    q, k, v = split(x)
    q1, k1, v1 = split(y)

    def attend(qh, kh, vh, residual):
        s = jnp.einsum("bhnd,bhmd->bhnm", qh, kh, precision=hp) * scale
        p = jax.nn.softmax(s, axis=-1)
        o = jnp.einsum("bhnm,bhmd->bhnd", p, vh, precision=hp)
        o = o.transpose(0, 2, 1, 3).reshape(B, N, C)
        return jnp.einsum("bnc,cd->bnd", o, w_proj, precision=hp) + b_proj + residual

    return attend(q, k, v1, x), attend(q1, k1, v, y)


if __name__ == "__main__":
    # Small shapes consistent with the module: batch=2, seq=8, dim=32, heads=8.
    B, N, D, H = 2, 8, 32, 8
    key = jax.random.PRNGKey(0)
    kx, ky, kw = jax.random.split(key, 3)
    x = jax.random.normal(kx, (B, N, D), dtype=jnp.float32)
    y = jax.random.normal(ky, (B, N, D), dtype=jnp.float32)

    module = SelfAttentionPallas(D, heads=H, key=kw)
    out = module({"x": x, "y": y})
    jax.block_until_ready(out["x"])
    jax.block_until_ready(out["y"])

    rx, ry = _ref_forward(x, y, module.w_qkv, module.b_qkv,
                          module.w_proj, module.b_proj, H, module.scale)
    assert out["x"].shape == (B, N, D) and out["y"].shape == (B, N, D)
    assert jnp.allclose(out["x"], rx, atol=2e-2, rtol=2e-2)
    assert jnp.allclose(out["y"], ry, atol=2e-2, rtol=2e-2)

    print("KERNEL_OK")
</pallas_src>

<mosaic_0001>
module attributes {stable_mosaic.version = 11 : i64} {
  func.func @kernel(%arg0: i32, %arg1: memref<1x8x32xf32, #tpu.memory_space<vmem>>, %arg2: memref<1x8x32xf32, #tpu.memory_space<vmem>>, %arg3: memref<32x96xf32, #tpu.memory_space<vmem>>, %arg4: memref<1x96xf32, #tpu.memory_space<vmem>>, %arg5: memref<32x32xf32, #tpu.memory_space<vmem>>, %arg6: memref<1x32xf32, #tpu.memory_space<vmem>>, %arg7: memref<1x8x32xf32, #tpu.memory_space<vmem>>, %arg8: memref<1x8x32xf32, #tpu.memory_space<vmem>>) attributes {dimension_semantics = [#tpu.dimension_semantics<parallel>], iteration_bounds = array<i64: 2>, scalar_prefetch = 0 : i64, scratch_operands = 0 : i64, tpu.core_type = #tpu.core_type<tc>, window_params = [{transform_indices = @transform_0, window_bounds = array<i64: 1, 8, 32>}, {transform_indices = @transform_1, window_bounds = array<i64: 1, 8, 32>}, {pipeline_mode = #tpu.pipeline_mode<synchronous>, transform_indices = @transform_2, window_bounds = array<i64: 32, 96>}, {pipeline_mode = #tpu.pipeline_mode<synchronous>, transform_indices = @transform_3, window_bounds = array<i64: 1, 96>}, {pipeline_mode = #tpu.pipeline_mode<synchronous>, transform_indices = @transform_4, window_bounds = array<i64: 32, 32>}, {pipeline_mode = #tpu.pipeline_mode<synchronous>, transform_indices = @transform_5, window_bounds = array<i64: 1, 32>}, {transform_indices = @transform_6, window_bounds = array<i64: 1, 8, 32>}, {transform_indices = @transform_7, window_bounds = array<i64: 1, 8, 32>}]} {
    %c0 = arith.constant 0 : index
    %c0_0 = arith.constant 0 : index
    %c0_1 = arith.constant 0 : index
    %0 = vector.load %arg1[%c0, %c0_0, %c0_1] : memref<1x8x32xf32, #tpu.memory_space<vmem>>, vector<1x8x32xf32>
    %1 = vector.shape_cast %0 : vector<1x8x32xf32> to vector<8x32xf32>
    %c0_2 = arith.constant 0 : index
    %c0_3 = arith.constant 0 : index
    %c0_4 = arith.constant 0 : index
    %2 = vector.load %arg2[%c0_2, %c0_3, %c0_4] : memref<1x8x32xf32, #tpu.memory_space<vmem>>, vector<1x8x32xf32>
    %3 = vector.shape_cast %2 : vector<1x8x32xf32> to vector<8x32xf32>
    %c0_5 = arith.constant 0 : index
    %c0_6 = arith.constant 0 : index
    %4 = vector.load %arg3[%c0_5, %c0_6] : memref<32x96xf32, #tpu.memory_space<vmem>>, vector<32x96xf32>
    %c0_7 = arith.constant 0 : index
    %c0_8 = arith.constant 0 : index
    %5 = vector.load %arg4[%c0_7, %c0_8] : memref<1x96xf32, #tpu.memory_space<vmem>>, vector<1x96xf32>
    %c0_9 = arith.constant 0 : index
    %c0_10 = arith.constant 0 : index
    %6 = vector.load %arg6[%c0_9, %c0_10] : memref<1x32xf32, #tpu.memory_space<vmem>>, vector<1x32xf32>
    %cst = arith.constant dense<0.000000e+00> : vector<8x96xf32>
    %7 = tpu.matmul %1, %4, %cst {dimension_numbers = #tpu.dot_dimension_numbers<[1], [0], [0], [1], [0, 0, 1, 1], [], []>} : vector<8x32xf32>, vector<32x96xf32>, vector<8x96xf32> -> vector<8x96xf32>
    %8 = vector.broadcast %5 : vector<1x96xf32> to vector<8x96xf32>
    %9 = arith.addf %7, %8 : vector<8x96xf32>
    %cst_11 = arith.constant dense<0.000000e+00> : vector<8x96xf32>
    %10 = tpu.matmul %3, %4, %cst_11 {dimension_numbers = #tpu.dot_dimension_numbers<[1], [0], [0], [1], [0, 0, 1, 1], [], []>} : vector<8x32xf32>, vector<32x96xf32>, vector<8x96xf32> -> vector<8x96xf32>
    %11 = vector.broadcast %5 : vector<1x96xf32> to vector<8x96xf32>
    %12 = arith.addf %10, %11 : vector<8x96xf32>
    %13 = vector.broadcast %6 : vector<1x32xf32> to vector<8x32xf32>
    %14 = arith.addf %1, %13 : vector<8x32xf32>
    %15 = vector.extract_strided_slice %9 {offsets = [0, 0], sizes = [8, 4], strides = [1, 1]} : vector<8x96xf32> to vector<8x4xf32>
    %16 = vector.extract_strided_slice %9 {offsets = [0, 32], sizes = [8, 4], strides = [1, 1]} : vector<8x96xf32> to vector<8x4xf32>
    %17 = vector.extract_strided_slice %12 {offsets = [0, 64], sizes = [8, 4], strides = [1, 1]} : vector<8x96xf32> to vector<8x4xf32>
    %cst_12 = arith.constant dense<0.000000e+00> : vector<8x8xf32>
    %18 = tpu.matmul %15, %16, %cst_12 {dimension_numbers = #tpu.dot_dimension_numbers<[1], [1], [0], [0], [0, 0, 1, 0], [], []>} : vector<8x4xf32>, vector<8x4xf32>, vector<8x8xf32> -> vector<8x8xf32>
    %cst_13 = arith.constant 5.000000e-01 : f32
    %19 = vector.broadcast %cst_13 : f32 to vector<8x8xf32>
    %20 = arith.mulf %18, %19 : vector<8x8xf32>
    %cst_14 = arith.constant dense<0xFF800000> : vector<8xf32>
    %21 = vector.multi_reduction <maximumf>, %20, %cst_14 [1] : vector<8x8xf32> to vector<8xf32>
    %22 = vector.shape_cast %21 : vector<8xf32> to vector<8x1xf32>
    %23 = vector.broadcast %22 : vector<8x1xf32> to vector<8x8xf32>
    %24 = arith.subf %20, %23 : vector<8x8xf32>
    %25 = math.exp %24 : vector<8x8xf32>
    %cst_15 = arith.constant dense<0.000000e+00> : vector<8xf32>
    %26 = vector.multi_reduction <add>, %25, %cst_15 [1] : vector<8x8xf32> to vector<8xf32>
    %27 = vector.shape_cast %26 : vector<8xf32> to vector<8x1xf32>
    %28 = vector.broadcast %27 : vector<8x1xf32> to vector<8x8xf32>
    %29 = arith.divf %25, %28 : vector<8x8xf32>
    %cst_16 = arith.constant dense<0.000000e+00> : vector<8x4xf32>
    %30 = tpu.matmul %29, %17, %cst_16 {dimension_numbers = #tpu.dot_dimension_numbers<[1], [0], [0], [1], [0, 0, 1, 1], [], []>} : vector<8x8xf32>, vector<8x4xf32>, vector<8x4xf32> -> vector<8x4xf32>
    %c0_17 = arith.constant 0 : index
    %c0_18 = arith.constant 0 : index
    %31 = vector.load %arg5[%c0_17, %c0_18] : memref<32x32xf32, #tpu.memory_space<vmem>>, vector<4x32xf32>
    %cst_19 = arith.constant dense<0.000000e+00> : vector<8x32xf32>
    %32 = tpu.matmul %30, %31, %cst_19 {dimension_numbers = #tpu.dot_dimension_numbers<[1], [0], [0], [1], [0, 0, 1, 1], [], []>} : vector<8x4xf32>, vector<4x32xf32>, vector<8x32xf32> -> vector<8x32xf32>
    %33 = arith.addf %14, %32 : vector<8x32xf32>
    %34 = vector.extract_strided_slice %9 {offsets = [0, 4], sizes = [8, 4], strides = [1, 1]} : vector<8x96xf32> to vector<8x4xf32>
    %35 = vector.extract_strided_slice %9 {offsets = [0, 36], sizes = [8, 4], strides = [1, 1]} : vector<8x96xf32> to vector<8x4xf32>
    %36 = vector.extract_strided_slice %12 {offsets = [0, 68], sizes = [8, 4], strides = [1, 1]} : vector<8x96xf32> to vector<8x4xf32>
    %cst_20 = arith.constant dense<0.000000e+00> : vector<8x8xf32>
    %37 = tpu.matmul %34, %35, %cst_20 {dimension_numbers = #tpu.dot_dimension_numbers<[1], [1], [0], [0], [0, 0, 1, 0], [], []>} : vector<8x4xf32>, vector<8x4xf32>, vector<8x8xf32> -> vector<8x8xf32>
    %cst_21 = arith.constant 5.000000e-01 : f32
    %38 = vector.broadcast %cst_21 : f32 to vector<8x8xf32>
    %39 = arith.mulf %37, %38 : vector<8x8xf32>
    %cst_22 = arith.constant dense<0xFF800000> : vector<8xf32>
    %40 = vector.multi_reduction <maximumf>, %39, %cst_22 [1] : vector<8x8xf32> to vector<8xf32>
    %41 = vector.shape_cast %40 : vector<8xf32> to vector<8x1xf32>
    %42 = vector.broadcast %41 : vector<8x1xf32> to vector<8x8xf32>
    %43 = arith.subf %39, %42 : vector<8x8xf32>
    %44 = math.exp %43 : vector<8x8xf32>
    %cst_23 = arith.constant dense<0.000000e+00> : vector<8xf32>
    %45 = vector.multi_reduction <add>, %44, %cst_23 [1] : vector<8x8xf32> to vector<8xf32>
    %46 = vector.shape_cast %45 : vector<8xf32> to vector<8x1xf32>
    %47 = vector.broadcast %46 : vector<8x1xf32> to vector<8x8xf32>
    %48 = arith.divf %44, %47 : vector<8x8xf32>
    %cst_24 = arith.constant dense<0.000000e+00> : vector<8x4xf32>
    %49 = tpu.matmul %48, %36, %cst_24 {dimension_numbers = #tpu.dot_dimension_numbers<[1], [0], [0], [1], [0, 0, 1, 1], [], []>} : vector<8x8xf32>, vector<8x4xf32>, vector<8x4xf32> -> vector<8x4xf32>
    %c4 = arith.constant 4 : index
    %c0_25 = arith.constant 0 : index
    %50 = vector.load %arg5[%c4, %c0_25] : memref<32x32xf32, #tpu.memory_space<vmem>>, vector<4x32xf32>
    %cst_26 = arith.constant dense<0.000000e+00> : vector<8x32xf32>
    %51 = tpu.matmul %49, %50, %cst_26 {dimension_numbers = #tpu.dot_dimension_numbers<[1], [0], [0], [1], [0, 0, 1, 1], [], []>} : vector<8x4xf32>, vector<4x32xf32>, vector<8x32xf32> -> vector<8x32xf32>
    %52 = arith.addf %33, %51 : vector<8x32xf32>
    %53 = vector.extract_strided_slice %9 {offsets = [0, 8], sizes = [8, 4], strides = [1, 1]} : vector<8x96xf32> to vector<8x4xf32>
    %54 = vector.extract_strided_slice %9 {offsets = [0, 40], sizes = [8, 4], strides = [1, 1]} : vector<8x96xf32> to vector<8x4xf32>
    %55 = vector.extract_strided_slice %12 {offsets = [0, 72], sizes = [8, 4], strides = [1, 1]} : vector<8x96xf32> to vector<8x4xf32>
    %cst_27 = arith.constant dense<0.000000e+00> : vector<8x8xf32>
    %56 = tpu.matmul %53, %54, %cst_27 {dimension_numbers = #tpu.dot_dimension_numbers<[1], [1], [0], [0], [0, 0, 1, 0], [], []>} : vector<8x4xf32>, vector<8x4xf32>, vector<8x8xf32> -> vector<8x8xf32>
    %cst_28 = arith.constant 5.000000e-01 : f32
    %57 = vector.broadcast %cst_28 : f32 to vector<8x8xf32>
    %58 = arith.mulf %56, %57 : vector<8x8xf32>
    %cst_29 = arith.constant dense<0xFF800000> : vector<8xf32>
    %59 = vector.multi_reduction <maximumf>, %58, %cst_29 [1] : vector<8x8xf32> to vector<8xf32>
    %60 = vector.shape_cast %59 : vector<8xf32> to vector<8x1xf32>
    %61 = vector.broadcast %60 : vector<8x1xf32> to vector<8x8xf32>
    %62 = arith.subf %58, %61 : vector<8x8xf32>
    %63 = math.exp %62 : vector<8x8xf32>
    %cst_30 = arith.constant dense<0.000000e+00> : vector<8xf32>
    %64 = vector.multi_reduction <add>, %63, %cst_30 [1] : vector<8x8xf32> to vector<8xf32>
    %65 = vector.shape_cast %64 : vector<8xf32> to vector<8x1xf32>
    %66 = vector.broadcast %65 : vector<8x1xf32> to vector<8x8xf32>
    %67 = arith.divf %63, %66 : vector<8x8xf32>
    %cst_31 = arith.constant dense<0.000000e+00> : vector<8x4xf32>
    %68 = tpu.matmul %67, %55, %cst_31 {dimension_numbers = #tpu.dot_dimension_numbers<[1], [0], [0], [1], [0, 0, 1, 1], [], []>} : vector<8x8xf32>, vector<8x4xf32>, vector<8x4xf32> -> vector<8x4xf32>
    %c8 = arith.constant 8 : index
    %c0_32 = arith.constant 0 : index
    %69 = vector.load %arg5[%c8, %c0_32] : memref<32x32xf32, #tpu.memory_space<vmem>>, vector<4x32xf32>
    %cst_33 = arith.constant dense<0.000000e+00> : vector<8x32xf32>
    %70 = tpu.matmul %68, %69, %cst_33 {dimension_numbers = #tpu.dot_dimension_numbers<[1], [0], [0], [1], [0, 0, 1, 1], [], []>} : vector<8x4xf32>, vector<4x32xf32>, vector<8x32xf32> -> vector<8x32xf32>
    %71 = arith.addf %52, %70 : vector<8x32xf32>
    %72 = vector.extract_strided_slice %9 {offsets = [0, 12], sizes = [8, 4], strides = [1, 1]} : vector<8x96xf32> to vector<8x4xf32>
    %73 = vector.extract_strided_slice %9 {offsets = [0, 44], sizes = [8, 4], strides = [1, 1]} : vector<8x96xf32> to vector<8x4xf32>
    %74 = vector.extract_strided_slice %12 {offsets = [0, 76], sizes = [8, 4], strides = [1, 1]} : vector<8x96xf32> to vector<8x4xf32>
    %cst_34 = arith.constant dense<0.000000e+00> : vector<8x8xf32>
    %75 = tpu.matmul %72, %73, %cst_34 {dimension_numbers = #tpu.dot_dimension_numbers<[1], [1], [0], [0], [0, 0, 1, 0], [], []>} : vector<8x4xf32>, vector<8x4xf32>, vector<8x8xf32> -> vector<8x8xf32>
    %cst_35 = arith.constant 5.000000e-01 : f32
    %76 = vector.broadcast %cst_35 : f32 to vector<8x8xf32>
    %77 = arith.mulf %75, %76 : vector<8x8xf32>
    %cst_36 = arith.constant dense<0xFF800000> : vector<8xf32>
    %78 = vector.multi_reduction <maximumf>, %77, %cst_36 [1] : vector<8x8xf32> to vector<8xf32>
    %79 = vector.shape_cast %78 : vector<8xf32> to vector<8x1xf32>
    %80 = vector.broadcast %79 : vector<8x1xf32> to vector<8x8xf32>
    %81 = arith.subf %77, %80 : vector<8x8xf32>
    %82 = math.exp %81 : vector<8x8xf32>
    %cst_37 = arith.constant dense<0.000000e+00> : vector<8xf32>
    %83 = vector.multi_reduction <add>, %82, %cst_37 [1] : vector<8x8xf32> to vector<8xf32>
    %84 = vector.shape_cast %83 : vector<8xf32> to vector<8x1xf32>
    %85 = vector.broadcast %84 : vector<8x1xf32> to vector<8x8xf32>
    %86 = arith.divf %82, %85 : vector<8x8xf32>
    %cst_38 = arith.constant dense<0.000000e+00> : vector<8x4xf32>
    %87 = tpu.matmul %86, %74, %cst_38 {dimension_numbers = #tpu.dot_dimension_numbers<[1], [0], [0], [1], [0, 0, 1, 1], [], []>} : vector<8x8xf32>, vector<8x4xf32>, vector<8x4xf32> -> vector<8x4xf32>
    %c12 = arith.constant 12 : index
    %c0_39 = arith.constant 0 : index
    %88 = vector.load %arg5[%c12, %c0_39] : memref<32x32xf32, #tpu.memory_space<vmem>>, vector<4x32xf32>
    %cst_40 = arith.constant dense<0.000000e+00> : vector<8x32xf32>
    %89 = tpu.matmul %87, %88, %cst_40 {dimension_numbers = #tpu.dot_dimension_numbers<[1], [0], [0], [1], [0, 0, 1, 1], [], []>} : vector<8x4xf32>, vector<4x32xf32>, vector<8x32xf32> -> vector<8x32xf32>
    %90 = arith.addf %71, %89 : vector<8x32xf32>
    %91 = vector.extract_strided_slice %9 {offsets = [0, 16], sizes = [8, 4], strides = [1, 1]} : vector<8x96xf32> to vector<8x4xf32>
    %92 = vector.extract_strided_slice %9 {offsets = [0, 48], sizes = [8, 4], strides = [1, 1]} : vector<8x96xf32> to vector<8x4xf32>
    %93 = vector.extract_strided_slice %12 {offsets = [0, 80], sizes = [8, 4], strides = [1, 1]} : vector<8x96xf32> to vector<8x4xf32>
    %cst_41 = arith.constant dense<0.000000e+00> : vector<8x8xf32>
    %94 = tpu.matmul %91, %92, %cst_41 {dimension_numbers = #tpu.dot_dimension_numbers<[1], [1], [0], [0], [0, 0, 1, 0], [], []>} : vector<8x4xf32>, vector<8x4xf32>, vector<8x8xf32> -> vector<8x8xf32>
    %cst_42 = arith.constant 5.000000e-01 : f32
    %95 = vector.broadcast %cst_42 : f32 to vector<8x8xf32>
    %96 = arith.mulf %94, %95 : vector<8x8xf32>
    %cst_43 = arith.constant dense<0xFF800000> : vector<8xf32>
    %97 = vector.multi_reduction <maximumf>, %96, %cst_43 [1] : vector<8x8xf32> to vector<8xf32>
    %98 = vector.shape_cast %97 : vector<8xf32> to vector<8x1xf32>
    %99 = vector.broadcast %98 : vector<8x1xf32> to vector<8x8xf32>
    %100 = arith.subf %96, %99 : vector<8x8xf32>
    %101 = math.exp %100 : vector<8x8xf32>
    %cst_44 = arith.constant dense<0.000000e+00> : vector<8xf32>
    %102 = vector.multi_reduction <add>, %101, %cst_44 [1] : vector<8x8xf32> to vector<8xf32>
    %103 = vector.shape_cast %102 : vector<8xf32> to vector<8x1xf32>
    %104 = vector.broadcast %103 : vector<8x1xf32> to vector<8x8xf32>
    %105 = arith.divf %101, %104 : vector<8x8xf32>
    %cst_45 = arith.constant dense<0.000000e+00> : vector<8x4xf32>
    %106 = tpu.matmul %105, %93, %cst_45 {dimension_numbers = #tpu.dot_dimension_numbers<[1], [0], [0], [1], [0, 0, 1, 1], [], []>} : vector<8x8xf32>, vector<8x4xf32>, vector<8x4xf32> -> vector<8x4xf32>
    %c16 = arith.constant 16 : index
    %c0_46 = arith.constant 0 : index
    %107 = vector.load %arg5[%c16, %c0_46] : memref<32x32xf32, #tpu.memory_space<vmem>>, vector<4x32xf32>
    %cst_47 = arith.constant dense<0.000000e+00> : vector<8x32xf32>
    %108 = tpu.matmul %106, %107, %cst_47 {dimension_numbers = #tpu.dot_dimension_numbers<[1], [0], [0], [1], [0, 0, 1, 1], [], []>} : vector<8x4xf32>, vector<4x32xf32>, vector<8x32xf32> -> vector<8x32xf32>
    %109 = arith.addf %90, %108 : vector<8x32xf32>
    %110 = vector.extract_strided_slice %9 {offsets = [0, 20], sizes = [8, 4], strides = [1, 1]} : vector<8x96xf32> to vector<8x4xf32>
    %111 = vector.extract_strided_slice %9 {offsets = [0, 52], sizes = [8, 4], strides = [1, 1]} : vector<8x96xf32> to vector<8x4xf32>
    %112 = vector.extract_strided_slice %12 {offsets = [0, 84], sizes = [8, 4], strides = [1, 1]} : vector<8x96xf32> to vector<8x4xf32>
    %cst_48 = arith.constant dense<0.000000e+00> : vector<8x8xf32>
    %113 = tpu.matmul %110, %111, %cst_48 {dimension_numbers = #tpu.dot_dimension_numbers<[1], [1], [0], [0], [0, 0, 1, 0], [], []>} : vector<8x4xf32>, vector<8x4xf32>, vector<8x8xf32> -> vector<8x8xf32>
    %cst_49 = arith.constant 5.000000e-01 : f32
    %114 = vector.broadcast %cst_49 : f32 to vector<8x8xf32>
    %115 = arith.mulf %113, %114 : vector<8x8xf32>
    %cst_50 = arith.constant dense<0xFF800000> : vector<8xf32>
    %116 = vector.multi_reduction <maximumf>, %115, %cst_50 [1] : vector<8x8xf32> to vector<8xf32>
    %117 = vector.shape_cast %116 : vector<8xf32> to vector<8x1xf32>
    %118 = vector.broadcast %117 : vector<8x1xf32> to vector<8x8xf32>
    %119 = arith.subf %115, %118 : vector<8x8xf32>
    %120 = math.exp %119 : vector<8x8xf32>
    %cst_51 = arith.constant dense<0.000000e+00> : vector<8xf32>
    %121 = vector.multi_reduction <add>, %120, %cst_51 [1] : vector<8x8xf32> to vector<8xf32>
    %122 = vector.shape_cast %121 : vector<8xf32> to vector<8x1xf32>
    %123 = vector.broadcast %122 : vector<8x1xf32> to vector<8x8xf32>
    %124 = arith.divf %120, %123 : vector<8x8xf32>
    %cst_52 = arith.constant dense<0.000000e+00> : vector<8x4xf32>
    %125 = tpu.matmul %124, %112, %cst_52 {dimension_numbers = #tpu.dot_dimension_numbers<[1], [0], [0], [1], [0, 0, 1, 1], [], []>} : vector<8x8xf32>, vector<8x4xf32>, vector<8x4xf32> -> vector<8x4xf32>
    %c20 = arith.constant 20 : index
    %c0_53 = arith.constant 0 : index
    %126 = vector.load %arg5[%c20, %c0_53] : memref<32x32xf32, #tpu.memory_space<vmem>>, vector<4x32xf32>
    %cst_54 = arith.constant dense<0.000000e+00> : vector<8x32xf32>
    %127 = tpu.matmul %125, %126, %cst_54 {dimension_numbers = #tpu.dot_dimension_numbers<[1], [0], [0], [1], [0, 0, 1, 1], [], []>} : vector<8x4xf32>, vector<4x32xf32>, vector<8x32xf32> -> vector<8x32xf32>
    %128 = arith.addf %109, %127 : vector<8x32xf32>
    %129 = vector.extract_strided_slice %9 {offsets = [0, 24], sizes = [8, 4], strides = [1, 1]} : vector<8x96xf32> to vector<8x4xf32>
    %130 = vector.extract_strided_slice %9 {offsets = [0, 56], sizes = [8, 4], strides = [1, 1]} : vector<8x96xf32> to vector<8x4xf32>
    %131 = vector.extract_strided_slice %12 {offsets = [0, 88], sizes = [8, 4], strides = [1, 1]} : vector<8x96xf32> to vector<8x4xf32>
    %cst_55 = arith.constant dense<0.000000e+00> : vector<8x8xf32>
    %132 = tpu.matmul %129, %130, %cst_55 {dimension_numbers = #tpu.dot_dimension_numbers<[1], [1], [0], [0], [0, 0, 1, 0], [], []>} : vector<8x4xf32>, vector<8x4xf32>, vector<8x8xf32> -> vector<8x8xf32>
    %cst_56 = arith.constant 5.000000e-01 : f32
    %133 = vector.broadcast %cst_56 : f32 to vector<8x8xf32>
    %134 = arith.mulf %132, %133 : vector<8x8xf32>
    %cst_57 = arith.constant dense<0xFF800000> : vector<8xf32>
    %135 = vector.multi_reduction <maximumf>, %134, %cst_57 [1] : vector<8x8xf32> to vector<8xf32>
    %136 = vector.shape_cast %135 : vector<8xf32> to vector<8x1xf32>
    %137 = vector.broadcast %136 : vector<8x1xf32> to vector<8x8xf32>
    %138 = arith.subf %134, %137 : vector<8x8xf32>
    %139 = math.exp %138 : vector<8x8xf32>
    %cst_58 = arith.constant dense<0.000000e+00> : vector<8xf32>
    %140 = vector.multi_reduction <add>, %139, %cst_58 [1] : vector<8x8xf32> to vector<8xf32>
    %141 = vector.shape_cast %140 : vector<8xf32> to vector<8x1xf32>
    %142 = vector.broadcast %141 : vector<8x1xf32> to vector<8x8xf32>
    %143 = arith.divf %139, %142 : vector<8x8xf32>
    %cst_59 = arith.constant dense<0.000000e+00> : vector<8x4xf32>
    %144 = tpu.matmul %143, %131, %cst_59 {dimension_numbers = #tpu.dot_dimension_numbers<[1], [0], [0], [1], [0, 0, 1, 1], [], []>} : vector<8x8xf32>, vector<8x4xf32>, vector<8x4xf32> -> vector<8x4xf32>
    %c24 = arith.constant 24 : index
    %c0_60 = arith.constant 0 : index
    %145 = vector.load %arg5[%c24, %c0_60] : memref<32x32xf32, #tpu.memory_space<vmem>>, vector<4x32xf32>
    %cst_61 = arith.constant dense<0.000000e+00> : vector<8x32xf32>
    %146 = tpu.matmul %144, %145, %cst_61 {dimension_numbers = #tpu.dot_dimension_numbers<[1], [0], [0], [1], [0, 0, 1, 1], [], []>} : vector<8x4xf32>, vector<4x32xf32>, vector<8x32xf32> -> vector<8x32xf32>
    %147 = arith.addf %128, %146 : vector<8x32xf32>
    %148 = vector.extract_strided_slice %9 {offsets = [0, 28], sizes = [8, 4], strides = [1, 1]} : vector<8x96xf32> to vector<8x4xf32>
    %149 = vector.extract_strided_slice %9 {offsets = [0, 60], sizes = [8, 4], strides = [1, 1]} : vector<8x96xf32> to vector<8x4xf32>
    %150 = vector.extract_strided_slice %12 {offsets = [0, 92], sizes = [8, 4], strides = [1, 1]} : vector<8x96xf32> to vector<8x4xf32>
    %cst_62 = arith.constant dense<0.000000e+00> : vector<8x8xf32>
    %151 = tpu.matmul %148, %149, %cst_62 {dimension_numbers = #tpu.dot_dimension_numbers<[1], [1], [0], [0], [0, 0, 1, 0], [], []>} : vector<8x4xf32>, vector<8x4xf32>, vector<8x8xf32> -> vector<8x8xf32>
    %cst_63 = arith.constant 5.000000e-01 : f32
    %152 = vector.broadcast %cst_63 : f32 to vector<8x8xf32>
    %153 = arith.mulf %151, %152 : vector<8x8xf32>
    %cst_64 = arith.constant dense<0xFF800000> : vector<8xf32>
    %154 = vector.multi_reduction <maximumf>, %153, %cst_64 [1] : vector<8x8xf32> to vector<8xf32>
    %155 = vector.shape_cast %154 : vector<8xf32> to vector<8x1xf32>
    %156 = vector.broadcast %155 : vector<8x1xf32> to vector<8x8xf32>
    %157 = arith.subf %153, %156 : vector<8x8xf32>
    %158 = math.exp %157 : vector<8x8xf32>
    %cst_65 = arith.constant dense<0.000000e+00> : vector<8xf32>
    %159 = vector.multi_reduction <add>, %158, %cst_65 [1] : vector<8x8xf32> to vector<8xf32>
    %160 = vector.shape_cast %159 : vector<8xf32> to vector<8x1xf32>
    %161 = vector.broadcast %160 : vector<8x1xf32> to vector<8x8xf32>
    %162 = arith.divf %158, %161 : vector<8x8xf32>
    %cst_66 = arith.constant dense<0.000000e+00> : vector<8x4xf32>
    %163 = tpu.matmul %162, %150, %cst_66 {dimension_numbers = #tpu.dot_dimension_numbers<[1], [0], [0], [1], [0, 0, 1, 1], [], []>} : vector<8x8xf32>, vector<8x4xf32>, vector<8x4xf32> -> vector<8x4xf32>
    %c28 = arith.constant 28 : index
    %c0_67 = arith.constant 0 : index
    %164 = vector.load %arg5[%c28, %c0_67] : memref<32x32xf32, #tpu.memory_space<vmem>>, vector<4x32xf32>
    %cst_68 = arith.constant dense<0.000000e+00> : vector<8x32xf32>
    %165 = tpu.matmul %163, %164, %cst_68 {dimension_numbers = #tpu.dot_dimension_numbers<[1], [0], [0], [1], [0, 0, 1, 1], [], []>} : vector<8x4xf32>, vector<4x32xf32>, vector<8x32xf32> -> vector<8x32xf32>
    %166 = arith.addf %147, %165 : vector<8x32xf32>
    %c0_69 = arith.constant 0 : index
    %c0_70 = arith.constant 0 : index
    %c0_71 = arith.constant 0 : index
    %167 = vector.load %arg7[%c0_69, %c0_70, %c0_71] : memref<1x8x32xf32, #tpu.memory_space<vmem>>, vector<1x8x32xf32>
    %168 = vector.shape_cast %167 : vector<1x8x32xf32> to vector<8x32xf32>
    %169 = vector.shape_cast %166 : vector<8x32xf32> to vector<1x8x32xf32>
    tpu.vector_store %arg7[%c0_69, %c0_70, %c0_71], %169 {strides = array<i32>} : memref<1x8x32xf32, #tpu.memory_space<vmem>>, vector<1x8x32xf32>,
    %170 = vector.broadcast %6 : vector<1x32xf32> to vector<8x32xf32>
    %171 = arith.addf %3, %170 : vector<8x32xf32>
    %172 = vector.extract_strided_slice %12 {offsets = [0, 0], sizes = [8, 4], strides = [1, 1]} : vector<8x96xf32> to vector<8x4xf32>
    %173 = vector.extract_strided_slice %12 {offsets = [0, 32], sizes = [8, 4], strides = [1, 1]} : vector<8x96xf32> to vector<8x4xf32>
    %174 = vector.extract_strided_slice %9 {offsets = [0, 64], sizes = [8, 4], strides = [1, 1]} : vector<8x96xf32> to vector<8x4xf32>
    %cst_72 = arith.constant dense<0.000000e+00> : vector<8x8xf32>
    %175 = tpu.matmul %172, %173, %cst_72 {dimension_numbers = #tpu.dot_dimension_numbers<[1], [1], [0], [0], [0, 0, 1, 0], [], []>} : vector<8x4xf32>, vector<8x4xf32>, vector<8x8xf32> -> vector<8x8xf32>
    %cst_73 = arith.constant 5.000000e-01 : f32
    %176 = vector.broadcast %cst_73 : f32 to vector<8x8xf32>
    %177 = arith.mulf %175, %176 : vector<8x8xf32>
    %cst_74 = arith.constant dense<0xFF800000> : vector<8xf32>
    %178 = vector.multi_reduction <maximumf>, %177, %cst_74 [1] : vector<8x8xf32> to vector<8xf32>
    %179 = vector.shape_cast %178 : vector<8xf32> to vector<8x1xf32>
    %180 = vector.broadcast %179 : vector<8x1xf32> to vector<8x8xf32>
    %181 = arith.subf %177, %180 : vector<8x8xf32>
    %182 = math.exp %181 : vector<8x8xf32>
    %cst_75 = arith.constant dense<0.000000e+00> : vector<8xf32>
    %183 = vector.multi_reduction <add>, %182, %cst_75 [1] : vector<8x8xf32> to vector<8xf32>
    %184 = vector.shape_cast %183 : vector<8xf32> to vector<8x1xf32>
    %185 = vector.broadcast %184 : vector<8x1xf32> to vector<8x8xf32>
    %186 = arith.divf %182, %185 : vector<8x8xf32>
    %cst_76 = arith.constant dense<0.000000e+00> : vector<8x4xf32>
    %187 = tpu.matmul %186, %174, %cst_76 {dimension_numbers = #tpu.dot_dimension_numbers<[1], [0], [0], [1], [0, 0, 1, 1], [], []>} : vector<8x8xf32>, vector<8x4xf32>, vector<8x4xf32> -> vector<8x4xf32>
    %c0_77 = arith.constant 0 : index
    %c0_78 = arith.constant 0 : index
    %188 = vector.load %arg5[%c0_77, %c0_78] : memref<32x32xf32, #tpu.memory_space<vmem>>, vector<4x32xf32>
    %cst_79 = arith.constant dense<0.000000e+00> : vector<8x32xf32>
    %189 = tpu.matmul %187, %188, %cst_79 {dimension_numbers = #tpu.dot_dimension_numbers<[1], [0], [0], [1], [0, 0, 1, 1], [], []>} : vector<8x4xf32>, vector<4x32xf32>, vector<8x32xf32> -> vector<8x32xf32>
    %190 = arith.addf %171, %189 : vector<8x32xf32>
    %191 = vector.extract_strided_slice %12 {offsets = [0, 4], sizes = [8, 4], strides = [1, 1]} : vector<8x96xf32> to vector<8x4xf32>
    %192 = vector.extract_strided_slice %12 {offsets = [0, 36], sizes = [8, 4], strides = [1, 1]} : vector<8x96xf32> to vector<8x4xf32>
    %193 = vector.extract_strided_slice %9 {offsets = [0, 68], sizes = [8, 4], strides = [1, 1]} : vector<8x96xf32> to vector<8x4xf32>
    %cst_80 = arith.constant dense<0.000000e+00> : vector<8x8xf32>
    %194 = tpu.matmul %191, %192, %cst_80 {dimension_numbers = #tpu.dot_dimension_numbers<[1], [1], [0], [0], [0, 0, 1, 0], [], []>} : vector<8x4xf32>, vector<8x4xf32>, vector<8x8xf32> -> vector<8x8xf32>
    %cst_81 = arith.constant 5.000000e-01 : f32
    %195 = vector.broadcast %cst_81 : f32 to vector<8x8xf32>
    %196 = arith.mulf %194, %195 : vector<8x8xf32>
    %cst_82 = arith.constant dense<0xFF800000> : vector<8xf32>
    %197 = vector.multi_reduction <maximumf>, %196, %cst_82 [1] : vector<8x8xf32> to vector<8xf32>
    %198 = vector.shape_cast %197 : vector<8xf32> to vector<8x1xf32>
    %199 = vector.broadcast %198 : vector<8x1xf32> to vector<8x8xf32>
    %200 = arith.subf %196, %199 : vector<8x8xf32>
    %201 = math.exp %200 : vector<8x8xf32>
    %cst_83 = arith.constant dense<0.000000e+00> : vector<8xf32>
    %202 = vector.multi_reduction <add>, %201, %cst_83 [1] : vector<8x8xf32> to vector<8xf32>
    %203 = vector.shape_cast %202 : vector<8xf32> to vector<8x1xf32>
    %204 = vector.broadcast %203 : vector<8x1xf32> to vector<8x8xf32>
    %205 = arith.divf %201, %204 : vector<8x8xf32>
    %cst_84 = arith.constant dense<0.000000e+00> : vector<8x4xf32>
    %206 = tpu.matmul %205, %193, %cst_84 {dimension_numbers = #tpu.dot_dimension_numbers<[1], [0], [0], [1], [0, 0, 1, 1], [], []>} : vector<8x8xf32>, vector<8x4xf32>, vector<8x4xf32> -> vector<8x4xf32>
    %c4_85 = arith.constant 4 : index
    %c0_86 = arith.constant 0 : index
    %207 = vector.load %arg5[%c4_85, %c0_86] : memref<32x32xf32, #tpu.memory_space<vmem>>, vector<4x32xf32>
    %cst_87 = arith.constant dense<0.000000e+00> : vector<8x32xf32>
    %208 = tpu.matmul %206, %207, %cst_87 {dimension_numbers = #tpu.dot_dimension_numbers<[1], [0], [0], [1], [0, 0, 1, 1], [], []>} : vector<8x4xf32>, vector<4x32xf32>, vector<8x32xf32> -> vector<8x32xf32>
    %209 = arith.addf %190, %208 : vector<8x32xf32>
    %210 = vector.extract_strided_slice %12 {offsets = [0, 8], sizes = [8, 4], strides = [1, 1]} : vector<8x96xf32> to vector<8x4xf32>
    %211 = vector.extract_strided_slice %12 {offsets = [0, 40], sizes = [8, 4], strides = [1, 1]} : vector<8x96xf32> to vector<8x4xf32>
    %212 = vector.extract_strided_slice %9 {offsets = [0, 72], sizes = [8, 4], strides = [1, 1]} : vector<8x96xf32> to vector<8x4xf32>
    %cst_88 = arith.constant dense<0.000000e+00> : vector<8x8xf32>
    %213 = tpu.matmul %210, %211, %cst_88 {dimension_numbers = #tpu.dot_dimension_numbers<[1], [1], [0], [0], [0, 0, 1, 0], [], []>} : vector<8x4xf32>, vector<8x4xf32>, vector<8x8xf32> -> vector<8x8xf32>
    %cst_89 = arith.constant 5.000000e-01 : f32
    %214 = vector.broadcast %cst_89 : f32 to vector<8x8xf32>
    %215 = arith.mulf %213, %214 : vector<8x8xf32>
    %cst_90 = arith.constant dense<0xFF800000> : vector<8xf32>
    %216 = vector.multi_reduction <maximumf>, %215, %cst_90 [1] : vector<8x8xf32> to vector<8xf32>
    %217 = vector.shape_cast %216 : vector<8xf32> to vector<8x1xf32>
    %218 = vector.broadcast %217 : vector<8x1xf32> to vector<8x8xf32>
    %219 = arith.subf %215, %218 : vector<8x8xf32>
    %220 = math.exp %219 : vector<8x8xf32>
    %cst_91 = arith.constant dense<0.000000e+00> : vector<8xf32>
    %221 = vector.multi_reduction <add>, %220, %cst_91 [1] : vector<8x8xf32> to vector<8xf32>
    %222 = vector.shape_cast %221 : vector<8xf32> to vector<8x1xf32>
    %223 = vector.broadcast %222 : vector<8x1xf32> to vector<8x8xf32>
    %224 = arith.divf %220, %223 : vector<8x8xf32>
    %cst_92 = arith.constant dense<0.000000e+00> : vector<8x4xf32>
    %225 = tpu.matmul %224, %212, %cst_92 {dimension_numbers = #tpu.dot_dimension_numbers<[1], [0], [0], [1], [0, 0, 1, 1], [], []>} : vector<8x8xf32>, vector<8x4xf32>, vector<8x4xf32> -> vector<8x4xf32>
    %c8_93 = arith.constant 8 : index
    %c0_94 = arith.constant 0 : index
    %226 = vector.load %arg5[%c8_93, %c0_94] : memref<32x32xf32, #tpu.memory_space<vmem>>, vector<4x32xf32>
    %cst_95 = arith.constant dense<0.000000e+00> : vector<8x32xf32>
    %227 = tpu.matmul %225, %226, %cst_95 {dimension_numbers = #tpu.dot_dimension_numbers<[1], [0], [0], [1], [0, 0, 1, 1], [], []>} : vector<8x4xf32>, vector<4x32xf32>, vector<8x32xf32> -> vector<8x32xf32>
    %228 = arith.addf %209, %227 : vector<8x32xf32>
    %229 = vector.extract_strided_slice %12 {offsets = [0, 12], sizes = [8, 4], strides = [1, 1]} : vector<8x96xf32> to vector<8x4xf32>
    %230 = vector.extract_strided_slice %12 {offsets = [0, 44], sizes = [8, 4], strides = [1, 1]} : vector<8x96xf32> to vector<8x4xf32>
    %231 = vector.extract_strided_slice %9 {offsets = [0, 76], sizes = [8, 4], strides = [1, 1]} : vector<8x96xf32> to vector<8x4xf32>
    %cst_96 = arith.constant dense<0.000000e+00> : vector<8x8xf32>
    %232 = tpu.matmul %229, %230, %cst_96 {dimension_numbers = #tpu.dot_dimension_numbers<[1], [1], [0], [0], [0, 0, 1, 0], [], []>} : vector<8x4xf32>, vector<8x4xf32>, vector<8x8xf32> -> vector<8x8xf32>
    %cst_97 = arith.constant 5.000000e-01 : f32
    %233 = vector.broadcast %cst_97 : f32 to vector<8x8xf32>
    %234 = arith.mulf %232, %233 : vector<8x8xf32>
    %cst_98 = arith.constant dense<0xFF800000> : vector<8xf32>
    %235 = vector.multi_reduction <maximumf>, %234, %cst_98 [1] : vector<8x8xf32> to vector<8xf32>
    %236 = vector.shape_cast %235 : vector<8xf32> to vector<8x1xf32>
    %237 = vector.broadcast %236 : vector<8x1xf32> to vector<8x8xf32>
    %238 = arith.subf %234, %237 : vector<8x8xf32>
    %239 = math.exp %238 : vector<8x8xf32>
    %cst_99 = arith.constant dense<0.000000e+00> : vector<8xf32>
    %240 = vector.multi_reduction <add>, %239, %cst_99 [1] : vector<8x8xf32> to vector<8xf32>
    %241 = vector.shape_cast %240 : vector<8xf32> to vector<8x1xf32>
    %242 = vector.broadcast %241 : vector<8x1xf32> to vector<8x8xf32>
    %243 = arith.divf %239, %242 : vector<8x8xf32>
    %cst_100 = arith.constant dense<0.000000e+00> : vector<8x4xf32>
    %244 = tpu.matmul %243, %231, %cst_100 {dimension_numbers = #tpu.dot_dimension_numbers<[1], [0], [0], [1], [0, 0, 1, 1], [], []>} : vector<8x8xf32>, vector<8x4xf32>, vector<8x4xf32> -> vector<8x4xf32>
    %c12_101 = arith.constant 12 : index
    %c0_102 = arith.constant 0 : index
    %245 = vector.load %arg5[%c12_101, %c0_102] : memref<32x32xf32, #tpu.memory_space<vmem>>, vector<4x32xf32>
    %cst_103 = arith.constant dense<0.000000e+00> : vector<8x32xf32>
    %246 = tpu.matmul %244, %245, %cst_103 {dimension_numbers = #tpu.dot_dimension_numbers<[1], [0], [0], [1], [0, 0, 1, 1], [], []>} : vector<8x4xf32>, vector<4x32xf32>, vector<8x32xf32> -> vector<8x32xf32>
    %247 = arith.addf %228, %246 : vector<8x32xf32>
    %248 = vector.extract_strided_slice %12 {offsets = [0, 16], sizes = [8, 4], strides = [1, 1]} : vector<8x96xf32> to vector<8x4xf32>
    %249 = vector.extract_strided_slice %12 {offsets = [0, 48], sizes = [8, 4], strides = [1, 1]} : vector<8x96xf32> to vector<8x4xf32>
    %250 = vector.extract_strided_slice %9 {offsets = [0, 80], sizes = [8, 4], strides = [1, 1]} : vector<8x96xf32> to vector<8x4xf32>
    %cst_104 = arith.constant dense<0.000000e+00> : vector<8x8xf32>
    %251 = tpu.matmul %248, %249, %cst_104 {dimension_numbers = #tpu.dot_dimension_numbers<[1], [1], [0], [0], [0, 0, 1, 0], [], []>} : vector<8x4xf32>, vector<8x4xf32>, vector<8x8xf32> -> vector<8x8xf32>
    %cst_105 = arith.constant 5.000000e-01 : f32
    %252 = vector.broadcast %cst_105 : f32 to vector<8x8xf32>
    %253 = arith.mulf %251, %252 : vector<8x8xf32>
    %cst_106 = arith.constant dense<0xFF800000> : vector<8xf32>
    %254 = vector.multi_reduction <maximumf>, %253, %cst_106 [1] : vector<8x8xf32> to vector<8xf32>
    %255 = vector.shape_cast %254 : vector<8xf32> to vector<8x1xf32>
    %256 = vector.broadcast %255 : vector<8x1xf32> to vector<8x8xf32>
    %257 = arith.subf %253, %256 : vector<8x8xf32>
    %258 = math.exp %257 : vector<8x8xf32>
    %cst_107 = arith.constant dense<0.000000e+00> : vector<8xf32>
    %259 = vector.multi_reduction <add>, %258, %cst_107 [1] : vector<8x8xf32> to vector<8xf32>
    %260 = vector.shape_cast %259 : vector<8xf32> to vector<8x1xf32>
    %261 = vector.broadcast %260 : vector<8x1xf32> to vector<8x8xf32>
    %262 = arith.divf %258, %261 : vector<8x8xf32>
    %cst_108 = arith.constant dense<0.000000e+00> : vector<8x4xf32>
    %263 = tpu.matmul %262, %250, %cst_108 {dimension_numbers = #tpu.dot_dimension_numbers<[1], [0], [0], [1], [0, 0, 1, 1], [], []>} : vector<8x8xf32>, vector<8x4xf32>, vector<8x4xf32> -> vector<8x4xf32>
    %c16_109 = arith.constant 16 : index
    %c0_110 = arith.constant 0 : index
    %264 = vector.load %arg5[%c16_109, %c0_110] : memref<32x32xf32, #tpu.memory_space<vmem>>, vector<4x32xf32>
    %cst_111 = arith.constant dense<0.000000e+00> : vector<8x32xf32>
    %265 = tpu.matmul %263, %264, %cst_111 {dimension_numbers = #tpu.dot_dimension_numbers<[1], [0], [0], [1], [0, 0, 1, 1], [], []>} : vector<8x4xf32>, vector<4x32xf32>, vector<8x32xf32> -> vector<8x32xf32>
    %266 = arith.addf %247, %265 : vector<8x32xf32>
    %267 = vector.extract_strided_slice %12 {offsets = [0, 20], sizes = [8, 4], strides = [1, 1]} : vector<8x96xf32> to vector<8x4xf32>
    %268 = vector.extract_strided_slice %12 {offsets = [0, 52], sizes = [8, 4], strides = [1, 1]} : vector<8x96xf32> to vector<8x4xf32>
    %269 = vector.extract_strided_slice %9 {offsets = [0, 84], sizes = [8, 4], strides = [1, 1]} : vector<8x96xf32> to vector<8x4xf32>
    %cst_112 = arith.constant dense<0.000000e+00> : vector<8x8xf32>
    %270 = tpu.matmul %267, %268, %cst_112 {dimension_numbers = #tpu.dot_dimension_numbers<[1], [1], [0], [0], [0, 0, 1, 0], [], []>} : vector<8x4xf32>, vector<8x4xf32>, vector<8x8xf32> -> vector<8x8xf32>
    %cst_113 = arith.constant 5.000000e-01 : f32
    %271 = vector.broadcast %cst_113 : f32 to vector<8x8xf32>
    %272 = arith.mulf %270, %271 : vector<8x8xf32>
    %cst_114 = arith.constant dense<0xFF800000> : vector<8xf32>
    %273 = vector.multi_reduction <maximumf>, %272, %cst_114 [1] : vector<8x8xf32> to vector<8xf32>
    %274 = vector.shape_cast %273 : vector<8xf32> to vector<8x1xf32>
    %275 = vector.broadcast %274 : vector<8x1xf32> to vector<8x8xf32>
    %276 = arith.subf %272, %275 : vector<8x8xf32>
    %277 = math.exp %276 : vector<8x8xf32>
    %cst_115 = arith.constant dense<0.000000e+00> : vector<8xf32>
    %278 = vector.multi_reduction <add>, %277, %cst_115 [1] : vector<8x8xf32> to vector<8xf32>
    %279 = vector.shape_cast %278 : vector<8xf32> to vector<8x1xf32>
    %280 = vector.broadcast %279 : vector<8x1xf32> to vector<8x8xf32>
    %281 = arith.divf %277, %280 : vector<8x8xf32>
    %cst_116 = arith.constant dense<0.000000e+00> : vector<8x4xf32>
    %282 = tpu.matmul %281, %269, %cst_116 {dimension_numbers = #tpu.dot_dimension_numbers<[1], [0], [0], [1], [0, 0, 1, 1], [], []>} : vector<8x8xf32>, vector<8x4xf32>, vector<8x4xf32> -> vector<8x4xf32>
    %c20_117 = arith.constant 20 : index
    %c0_118 = arith.constant 0 : index
    %283 = vector.load %arg5[%c20_117, %c0_118] : memref<32x32xf32, #tpu.memory_space<vmem>>, vector<4x32xf32>
    %cst_119 = arith.constant dense<0.000000e+00> : vector<8x32xf32>
    %284 = tpu.matmul %282, %283, %cst_119 {dimension_numbers = #tpu.dot_dimension_numbers<[1], [0], [0], [1], [0, 0, 1, 1], [], []>} : vector<8x4xf32>, vector<4x32xf32>, vector<8x32xf32> -> vector<8x32xf32>
    %285 = arith.addf %266, %284 : vector<8x32xf32>
    %286 = vector.extract_strided_slice %12 {offsets = [0, 24], sizes = [8, 4], strides = [1, 1]} : vector<8x96xf32> to vector<8x4xf32>
    %287 = vector.extract_strided_slice %12 {offsets = [0, 56], sizes = [8, 4], strides = [1, 1]} : vector<8x96xf32> to vector<8x4xf32>
    %288 = vector.extract_strided_slice %9 {offsets = [0, 88], sizes = [8, 4], strides = [1, 1]} : vector<8x96xf32> to vector<8x4xf32>
    %cst_120 = arith.constant dense<0.000000e+00> : vector<8x8xf32>
    %289 = tpu.matmul %286, %287, %cst_120 {dimension_numbers = #tpu.dot_dimension_numbers<[1], [1], [0], [0], [0, 0, 1, 0], [], []>} : vector<8x4xf32>, vector<8x4xf32>, vector<8x8xf32> -> vector<8x8xf32>
    %cst_121 = arith.constant 5.000000e-01 : f32
    %290 = vector.broadcast %cst_121 : f32 to vector<8x8xf32>
    %291 = arith.mulf %289, %290 : vector<8x8xf32>
    %cst_122 = arith.constant dense<0xFF800000> : vector<8xf32>
    %292 = vector.multi_reduction <maximumf>, %291, %cst_122 [1] : vector<8x8xf32> to vector<8xf32>
    %293 = vector.shape_cast %292 : vector<8xf32> to vector<8x1xf32>
    %294 = vector.broadcast %293 : vector<8x1xf32> to vector<8x8xf32>
    %295 = arith.subf %291, %294 : vector<8x8xf32>
    %296 = math.exp %295 : vector<8x8xf32>
    %cst_123 = arith.constant dense<0.000000e+00> : vector<8xf32>
    %297 = vector.multi_reduction <add>, %296, %cst_123 [1] : vector<8x8xf32> to vector<8xf32>
    %298 = vector.shape_cast %297 : vector<8xf32> to vector<8x1xf32>
    %299 = vector.broadcast %298 : vector<8x1xf32> to vector<8x8xf32>
    %300 = arith.divf %296, %299 : vector<8x8xf32>
    %cst_124 = arith.constant dense<0.000000e+00> : vector<8x4xf32>
    %301 = tpu.matmul %300, %288, %cst_124 {dimension_numbers = #tpu.dot_dimension_numbers<[1], [0], [0], [1], [0, 0, 1, 1], [], []>} : vector<8x8xf32>, vector<8x4xf32>, vector<8x4xf32> -> vector<8x4xf32>
    %c24_125 = arith.constant 24 : index
    %c0_126 = arith.constant 0 : index
    %302 = vector.load %arg5[%c24_125, %c0_126] : memref<32x32xf32, #tpu.memory_space<vmem>>, vector<4x32xf32>
    %cst_127 = arith.constant dense<0.000000e+00> : vector<8x32xf32>
    %303 = tpu.matmul %301, %302, %cst_127 {dimension_numbers = #tpu.dot_dimension_numbers<[1], [0], [0], [1], [0, 0, 1, 1], [], []>} : vector<8x4xf32>, vector<4x32xf32>, vector<8x32xf32> -> vector<8x32xf32>
    %304 = arith.addf %285, %303 : vector<8x32xf32>
    %305 = vector.extract_strided_slice %12 {offsets = [0, 28], sizes = [8, 4], strides = [1, 1]} : vector<8x96xf32> to vector<8x4xf32>
    %306 = vector.extract_strided_slice %12 {offsets = [0, 60], sizes = [8, 4], strides = [1, 1]} : vector<8x96xf32> to vector<8x4xf32>
    %307 = vector.extract_strided_slice %9 {offsets = [0, 92], sizes = [8, 4], strides = [1, 1]} : vector<8x96xf32> to vector<8x4xf32>
    %cst_128 = arith.constant dense<0.000000e+00> : vector<8x8xf32>
    %308 = tpu.matmul %305, %306, %cst_128 {dimension_numbers = #tpu.dot_dimension_numbers<[1], [1], [0], [0], [0, 0, 1, 0], [], []>} : vector<8x4xf32>, vector<8x4xf32>, vector<8x8xf32> -> vector<8x8xf32>
    %cst_129 = arith.constant 5.000000e-01 : f32
    %309 = vector.broadcast %cst_129 : f32 to vector<8x8xf32>
    %310 = arith.mulf %308, %309 : vector<8x8xf32>
    %cst_130 = arith.constant dense<0xFF800000> : vector<8xf32>
    %311 = vector.multi_reduction <maximumf>, %310, %cst_130 [1] : vector<8x8xf32> to vector<8xf32>
    %312 = vector.shape_cast %311 : vector<8xf32> to vector<8x1xf32>
    %313 = vector.broadcast %312 : vector<8x1xf32> to vector<8x8xf32>
    %314 = arith.subf %310, %313 : vector<8x8xf32>
    %315 = math.exp %314 : vector<8x8xf32>
    %cst_131 = arith.constant dense<0.000000e+00> : vector<8xf32>
    %316 = vector.multi_reduction <add>, %315, %cst_131 [1] : vector<8x8xf32> to vector<8xf32>
    %317 = vector.shape_cast %316 : vector<8xf32> to vector<8x1xf32>
    %318 = vector.broadcast %317 : vector<8x1xf32> to vector<8x8xf32>
    %319 = arith.divf %315, %318 : vector<8x8xf32>
    %cst_132 = arith.constant dense<0.000000e+00> : vector<8x4xf32>
    %320 = tpu.matmul %319, %307, %cst_132 {dimension_numbers = #tpu.dot_dimension_numbers<[1], [0], [0], [1], [0, 0, 1, 1], [], []>} : vector<8x8xf32>, vector<8x4xf32>, vector<8x4xf32> -> vector<8x4xf32>
    %c28_133 = arith.constant 28 : index
    %c0_134 = arith.constant 0 : index
    %321 = vector.load %arg5[%c28_133, %c0_134] : memref<32x32xf32, #tpu.memory_space<vmem>>, vector<4x32xf32>
    %cst_135 = arith.constant dense<0.000000e+00> : vector<8x32xf32>
    %322 = tpu.matmul %320, %321, %cst_135 {dimension_numbers = #tpu.dot_dimension_numbers<[1], [0], [0], [1], [0, 0, 1, 1], [], []>} : vector<8x4xf32>, vector<4x32xf32>, vector<8x32xf32> -> vector<8x32xf32>
    %323 = arith.addf %304, %322 : vector<8x32xf32>
    %c0_136 = arith.constant 0 : index
    %c0_137 = arith.constant 0 : index
    %c0_138 = arith.constant 0 : index
    %324 = vector.load %arg8[%c0_136, %c0_137, %c0_138] : memref<1x8x32xf32, #tpu.memory_space<vmem>>, vector<1x8x32xf32>
    %325 = vector.shape_cast %324 : vector<1x8x32xf32> to vector<8x32xf32>
    %326 = vector.shape_cast %323 : vector<8x32xf32> to vector<1x8x32xf32>
    tpu.vector_store %arg8[%c0_136, %c0_137, %c0_138], %326 {strides = array<i32>} : memref<1x8x32xf32, #tpu.memory_space<vmem>>, vector<1x8x32xf32>,
    return
  }
  func.func @transform_0(%arg0: i32) -> (i32, i32, i32) {
    %c0_i32 = arith.constant 0 : i32
    %c0_i32_0 = arith.constant 0 : i32
    %c0_i32_1 = arith.constant 0 : i32
    return %arg0, %c0_i32, %c0_i32_0 : i32, i32, i32
  }
  func.func @transform_1(%arg0: i32) -> (i32, i32, i32) {
    %c0_i32 = arith.constant 0 : i32
    %c0_i32_0 = arith.constant 0 : i32
    %c0_i32_1 = arith.constant 0 : i32
    return %arg0, %c0_i32, %c0_i32_0 : i32, i32, i32
  }
  func.func @transform_2(%arg0: i32) -> (i32, i32) {
    %c0_i32 = arith.constant 0 : i32
    %c0_i32_0 = arith.constant 0 : i32
    %c0_i32_1 = arith.constant 0 : i32
    return %c0_i32, %c0_i32_0 : i32, i32
  }
  func.func @transform_3(%arg0: i32) -> (i32, i32) {
    %c0_i32 = arith.constant 0 : i32
    %c0_i32_0 = arith.constant 0 : i32
    %c0_i32_1 = arith.constant 0 : i32
    return %c0_i32, %c0_i32_0 : i32, i32
  }
  func.func @transform_4(%arg0: i32) -> (i32, i32) {
    %c0_i32 = arith.constant 0 : i32
    %c0_i32_0 = arith.constant 0 : i32
    %c0_i32_1 = arith.constant 0 : i32
    return %c0_i32, %c0_i32_0 : i32, i32
  }
  func.func @transform_5(%arg0: i32) -> (i32, i32) {
    %c0_i32 = arith.constant 0 : i32
    %c0_i32_0 = arith.constant 0 : i32
    %c0_i32_1 = arith.constant 0 : i32
    return %c0_i32, %c0_i32_0 : i32, i32
  }
  func.func @transform_6(%arg0: i32) -> (i32, i32, i32) {
    %c0_i32 = arith.constant 0 : i32
    %c0_i32_0 = arith.constant 0 : i32
    %c0_i32_1 = arith.constant 0 : i32
    return %arg0, %c0_i32, %c0_i32_0 : i32, i32, i32
  }
  func.func @transform_7(%arg0: i32) -> (i32, i32, i32) {
    %c0_i32 = arith.constant 0 : i32
    %c0_i32_0 = arith.constant 0 : i32
    %c0_i32_1 = arith.constant 0 : i32
    return %arg0, %c0_i32, %c0_i32_0 : i32, i32, i32
  }
}

</mosaic_0001>

<bundles_post_ra>
// kernel: self_attention_pallas.1
= control target key start
LH: loop header
LB: loop body
LE: loop exit
PB: predicated region body
PF: predicated region fallthrough
CT: control target
= control target key end

     0   :  { %s6336_s0 = inlined_call_operand.hbm [shape: f32[2,8,32], index: 0, kind: input, shape index: {}]   ;;  %s6337_s1 = inlined_call_operand.hbm [shape: f32[2,8,32], index: 1, kind: input, shape index: {}]   ;;  %s6338_s2 = inlined_call_operand.hbm [shape: f32[32,96], index: 2, kind: input, shape index: {}]   ;;  %s6339_s3 = inlined_call_operand.vmem [shape: f32[1,96], index: 3, kind: input, shape index: {}]   ;;  %s6340_s4 = inlined_call_operand.hbm [shape: f32[32,32], index: 4, kind: input, shape index: {}]   ;;  %s6341_s5 = inlined_call_operand.vmem [shape: f32[1,32], index: 5, kind: input, shape index: {}]   ;;  %s6342_s6 = inlined_call_operand.hbm [shape: f32[2,8,32], index: 6, kind: output, shape index: {0}]   ;;  %s6343_s7 = inlined_call_operand.hbm [shape: f32[2,8,32], index: 7, kind: output, shape index: {1}]  }
   0x1   :  { %6353 = sst [smem:[#allocation21_spill]] %s6338_s2 }
   0x2   :  { %6354 = sst [smem:[#allocation22_spill]] %s6340_s4 }
   0x3   :  { %13 = vsyncpa [#allocation3], 0 }
   0x4   :  { %15 = vsyncpa [#allocation3 + $0x1], 0 }
   0x5   :  { %16 = vsyncpa [#allocation6], 0 }
   0x6   :  { %18 = vsyncpa [#allocation6 + $0x1], 0 }
   0x7   :  { %19 = vsyncpa [#allocation9], 0 }
   0x8   :  { %20 = vsyncpa [#allocation4], 0 }
   0x9   :  { %22 = vsyncpa [#allocation4 + $0x1], 0 }
   0xa   :  { %23 = vsyncpa [#allocation12], 0 }
   0xb   :  { %25 = vsyncpa [#allocation12 + $0x1], 0  ;;  %s5611_s24 = smov 0   ;;  %s5613_s25 = smov 0  }
   0xc   :  { %s5615_s26 = smov 0   ;;  %s5617_s27 = smov 0  }
   0xd LB: > { %6355 = sst [smem:[#allocation19_spill]] %s5531_s26  ;;  %s5632_s28 = sadd.s32 4294967295, %s5535_s27   ;;  %s5535_s27 = sphi %s5617_s27, %s6383_s27   ;;  %s5531_s26 = sphi %s5615_s26, %s6380_s26   ;;  %s5527_s25 = sphi %s5613_s25, %s6382_s25   ;;  %s5523_s24 = sphi %s5611_s24, %s6381_s24  }
   0xe   : > { %s4623_s29 = sadd.s32 4294967294, %s5535_s27   ;;  %p51_p0 = scmp.ne.s32.totalorder %s5527_s25, %s5523_s24 }
   0xf   : > { %p6344_p1 = scmp.eq.s32.totalorder %s5632_s28, 0  ;;  %p191_p3 = scmp.eq.s32.totalorder %s4623_s29, 1 }
  0x10   : > { %p4624_p5 = scmp.ge.s32.totalorder %s5535_s27, 1  ;;  %p224_p7 = scmp.lt.s32.totalorder %s5535_s27, 3 }
  0x11   : > { %p5641_p4 = por %p6344_p1, %p51_p0  ;;  %p5646_p6 = por %p191_p3, %p51_p0 }
  0x12   : > { %p5651_p8 = pnand %p4624_p5, %p224_p7  ;;  %s5537_s10 = smov [#allocation7]  }
  0x13   : > { %s6356_s30 = scalar_select %p5641_p4, 1, 0 }
  0x14   : > { %s6357_s8 = scalar_select %p5646_p6, 1, 0 }
  0x15   : > { %s6358_s9 = scalar_select %p5651_p8, 1, 0 }
  0x16   : > { %s236_s11 = sshll.u32 %s5537_s10, 4  ;;  %p5155_p9 = pneg %p5651_p8  ;;  %s5655_s11 = int_to_ptr.vmem [resolvable:$true] %s236_s11 }
  0x17   : > { %s5538_s13 = smov [#allocation8]   ;;  %s6360_s2 = sld [smem:[#allocation21_spill]] }
  0x18   : > { %p5662_p11 = pnand %p5155_p9, %p6344_p1  ;;  %s252_s14 = sshll.u32 %s5538_s13, 4  ;;  %s5666_s14 = int_to_ptr.vmem [resolvable:$true] %s252_s14 }
  0x1a   : > { %p5311_p13 = pneg %p5662_p11 }
  0x1d   : > { %s5309_s17 = scalar_lea.hbm %s6360_s2, 512 }
  0x1e   : > { %p5310_p12 = scmp.ne.s32.totalorder %s6360_s2, %s5309_s17  ;;  %p5316_p5 = scmp.lt.u32.totalorder %s5309_s17, %s6360_s2 }
  0x20   : > { %p5312_p0 = pnand %p5311_p13, %p5310_p12 }
  0x22   : > { %p5313_p3 = pneg %p5312_p0 }
  0x24   : > { %p5318_p7 = pnand %p5316_p5, %p5313_p3 }
  0x26   : > { %5321 = shalt.err (!%p5318_p7)
}
  0x27   : > { %s5322_s22 = scalar_lea.vmem %s5655_s11, 512  ;;  %p5330_p2 = scmp.lt.s32.totalorder %s5655_s11, %s5655_s11 }
  0x28   : > { %p5323_p9 = scmp.ne.s32.totalorder %s5655_s11, %s5322_s22  ;;  %p5331_p12 = scmp.lt.s32.totalorder %s5322_s22, %s5322_s22 }
  0x2a   : > { %p5325_p10 = pnand %p5323_p9, %p5311_p13  ;;  %p5332_p0 = por %p5331_p12, %p5330_p2 }
  0x2c   : > { %p5326_p1 = pneg %p5325_p10 }
  0x2e   : > { %p5333_p6 = pnand %p5332_p0, %p5326_p1 }
  0x30   : > { %5336 = shalt.err (!%p5333_p6)
}
  0x31   : > { %s5539_s23 = smov 128   ;;  %s5540_s29 = smov 8  }
  0x32   : > { %5158 = dma.hbm_to_vmem [thread:$0]  (!%p5662_p11), %s6360_s2, 512, %s5655_s11, [#allocation6], %s5539_s23, %s5539_s23, %s5540_s29  }
  0x33   : > { %s6361_s4 = sld [smem:[#allocation22_spill]] }
  0x39   : > { %s5337_s17 = scalar_lea.hbm %s6361_s4, 512 }
  0x3a   : > { %p5338_p2 = scmp.ne.s32.totalorder %s6361_s4, %s5337_s17  ;;  %p5344_p10 = scmp.lt.u32.totalorder %s5337_s17, %s6361_s4 }
  0x3c   : > { %p5340_p1 = pnand %p5338_p2, %p5311_p13 }
  0x3e   : > { %p5341_p6 = pneg %p5340_p1 }
  0x40   : > { %p5346_p3 = pnand %p5344_p10, %p5341_p6 }
  0x42   : > { %5349 = shalt.err (!%p5346_p3)
}
  0x43   : > { %s5350_s11 = scalar_lea.vmem %s5666_s14, 512  ;;  %p5358_p12 = scmp.lt.s32.totalorder %s5666_s14, %s5666_s14 }
  0x44   : > { %p5351_p5 = scmp.ne.s32.totalorder %s5666_s14, %s5350_s11  ;;  %p5359_p0 = scmp.lt.s32.totalorder %s5350_s11, %s5350_s11 }
  0x46   : > { %p5353_p7 = pnand %p5351_p5, %p5311_p13  ;;  %p5360_p2 = por %p5359_p0, %p5358_p12 }
  0x48   : > { %p5354_p9 = pneg %p5353_p7 }
  0x4a   : > { %p5361_p1 = pnand %p5360_p2, %p5354_p9 }
  0x4c   : > { %5364 = shalt.err (!%p5361_p1)
}
  0x4d   : > { %5161 = dma.hbm_to_vmem [thread:$0]  (!%p5662_p11), %s6361_s4, 512, %s5666_s14, [#allocation9], %s5539_s23, %s5539_s23, %s5540_s29  }
  0x4e   : > { %s5721_s13 = sadd.s32 1, %s5535_s27   ;;  %s38_s12 = sadd.s32 1, %s5531_s26 }
  0x4f   : > { %s35_s15 = ssub.s32 %s5535_s27, %s5721_s13  ;;  %p45_p13 = scmp.ne.s32.totalorder %s5531_s26, %s5527_s25 }
  0x50   : > { %p36_p6 = scmp.eq.s32.totalorder %s35_s15, 0  ;;  %p46_p10 = scmp.eq.s32.totalorder %s5535_s27, 0 }
  0x51   : > { %p6362_p3 = scmp.eq.s32.totalorder %s5632_s28, 1  ;;  %p5178_p7 = scmp.lt.s32.totalorder %s5535_s27, 2 }
  0x52   : > { %s5737_s17 = scalar_select %p36_p6, %s5531_s26, %s38_s12  }
  0x53   : > { %p5731_p5 = por %p6362_p3, %p45_p13  ;;  %p47_p9 = por %p46_p10, %p45_p13 }
  0x54   : > { %6364 = sst [smem:[#allocation20_spill]] %s5737_s17  ;;  %s269_s18 = sand.u32 1, %s5531_s26  }
  0x55   : > { %s6363_s16 = scalar_select %p5731_p5, 1, 0 }
  0x56   : > { %s5740_s14 = sshll.u32 %s269_s18, 3  ;;  %s4629_s23 = sshll.u32 %s5535_s27, 7 }
  0x57   : > { %s5746_s20 = scalar_lea.hbm %s6336_s0, %s4629_s23  ;;  %s273_s21 = scalar_lea.vmem [#allocation2], %s5740_s14 }
  0x58   : > { %s280_s11 = sshll.u32 %s273_s21, 4  ;;  %p5751_p11 = pnand %p5178_p7, %p47_p9  ;;  %s5749_s11 = int_to_ptr.vmem [resolvable:$true] %s280_s11 }
  0x59   : > { %s5758_s15 = scalar_lea.hbm %s6337_s1, %s4629_s23  ;;  %s287_s29 = sand.u32 1, %s5535_s27  }
  0x5a   : > { %s270_s19 = scalar_lea.sflag [#allocation3], %s269_s18  ;;  %s5365_s2 = scalar_lea.hbm %s5746_s20, 128 }
  0x5b   : > { %p5366_p12 = scmp.ne.s32.totalorder %s5746_s20, %s5365_s2  ;;  %p5367_p0 = pneg %p5751_p11 }
  0x5c   : > { %s5370_s17 = scalar_lea.hbm %s6336_s0, 256  ;;  %p5371_p13 = scmp.lt.u32.totalorder %s5746_s20, %s6336_s0 }
  0x5d   : > { %p5368_p2 = pnand %p5367_p0, %p5366_p12  ;;  %p5372_p6 = scmp.lt.u32.totalorder %s5370_s17, %s5365_s2 }
  0x5e   : > { %p5374_p3 = scmp.lt.u32.totalorder %s5365_s2, %s5746_s20 }
  0x5f   : > { %p5369_p1 = pneg %p5368_p2  ;;  %p5373_p10 = por %p5372_p6, %p5371_p13 }
  0x61   : > { %p5375_p7 = por %p5374_p3, %p5373_p10 }
  0x63   : > { %p5376_p9 = pnand %p5375_p7, %p5369_p1 }
  0x65   : > { %5379 = shalt.err (!%p5376_p9)
}
  0x66   : > { %s5380_s18 = scalar_lea.vmem %s5749_s11, 128  ;;  %s5541_s4 = smov [#allocation2]  }
  0x67   : > { %p5381_p12 = scmp.ne.s32.totalorder %s5749_s11, %s5380_s18  ;;  %s5385_s23 = sshll.u32 %s5541_s4, 4  ;;  %s5386_s23 = int_to_ptr.vmem [resolvable:$false] %s5385_s23 }
  0x68   : > { %s5387_s26 = scalar_lea.vmem %s5386_s23, 256  ;;  %p5388_p4 = scmp.lt.s32.totalorder %s5749_s11, %s5386_s23 }
  0x69   : > { %p5383_p2 = pnand %p5381_p12, %p5367_p0  ;;  %p5389_p13 = scmp.lt.s32.totalorder %s5387_s26, %s5380_s18 }
  0x6b   : > { %p5384_p5 = pneg %p5383_p2  ;;  %p5390_p6 = por %p5389_p13, %p5388_p4 }
  0x6d   : > { %p5391_p10 = pnand %p5390_p6, %p5384_p5 }
  0x6f   : > { %5394 = shalt.err (!%p5391_p10)
}
  0x70   : > { %5165 = dma.hbm_to_vmem [thread:$0]  (!%p5751_p11), %s5746_s20, 128, %s5749_s11, %s270_s19  }
  0x71   : > { %s291_s2 = scalar_lea.vmem [#allocation5], %s5740_s14  ;;  %s288_s12 = scalar_lea.sflag [#allocation6], %s287_s29 }
  0x72   : > { %s298_s17 = sshll.u32 %s291_s2, 4  ;;  %s5395_s21 = scalar_lea.hbm %s5758_s15, 128  ;;  %s299_s17 = int_to_ptr.vmem [resolvable:$true] %s298_s17 }
  0x73   : > { %p5396_p4 = scmp.ne.s32.totalorder %s5758_s15, %s5395_s21  ;;  %s5400_s4 = scalar_lea.hbm %s6337_s1, 256 }
  0x74   : > { %p5401_p3 = scmp.lt.u32.totalorder %s5758_s15, %s6337_s1  ;;  %p5402_p7 = scmp.lt.u32.totalorder %s5400_s4, %s5395_s21 }
  0x75   : > { %p5398_p5 = pnand %p5396_p4, %p5367_p0  ;;  %p5404_p12 = scmp.lt.u32.totalorder %s5395_s21, %s5758_s15 }
  0x76   : > { %p5403_p9 = por %p5402_p7, %p5401_p3 }
  0x77   : > { %p5399_p1 = pneg %p5398_p5 }
  0x78   : > { %p5405_p2 = por %p5404_p12, %p5403_p9 }
  0x7a   : > { %p5406_p13 = pnand %p5405_p2, %p5399_p1 }
  0x7c   : > { %5409 = shalt.err (!%p5406_p13)
}
  0x7d   : > { %s5410_s14 = scalar_lea.vmem %s299_s17, 128  ;;  %s5542_s20 = smov [#allocation5]  }
  0x7e   : > { %p5411_p6 = scmp.ne.s32.totalorder %s299_s17, %s5410_s14  ;;  %s5415_s11 = sshll.u32 %s5542_s20, 4  ;;  %s5416_s11 = int_to_ptr.vmem [resolvable:$false] %s5415_s11 }
  0x7f   : > { %s5417_s29 = scalar_lea.vmem %s5416_s11, 256  ;;  %p5418_p5 = scmp.lt.s32.totalorder %s299_s17, %s5416_s11 }
  0x80   : > { %p5413_p10 = pnand %p5411_p6, %p5367_p0  ;;  %p5419_p8 = scmp.lt.s32.totalorder %s5417_s29, %s5410_s14 }
  0x82   : > { %p5414_p4 = pneg %p5413_p10  ;;  %p5420_p3 = por %p5419_p8, %p5418_p5 }
  0x84   : > { %p5421_p7 = pnand %p5420_p3, %p5414_p4 }
  0x86   : > { %5424 = shalt.err (!%p5421_p7)
}
  0x87   : > { %5168 = dma.hbm_to_vmem [thread:$0]  (!%p5751_p11), %s5758_s15, 128, %s299_s17, %s288_s12  }
  0x88   : > { %p6366_p1 = scmp.ne.s32.totalorder %s6358_s9, 0 }
  0x89   : > { %s5811_s19 = sand.u32 (!%p6366_p1), 1, %s5527_s25   ;;  %p6367_p8 = scmp.ne.s32.totalorder (!%p6366_p1), %s6356_s30, 0 }
  0x8a   : > { %307 = sbr.rel (%p6366_p1) target bundleno = 5751 (0x1677), region = 44  ;;  %s5814_s2 = sshll.u32 (!%p6366_p1), %s5811_s19, 3 }
  0x8b   : > { %s310_s21 = scalar_lea.sflag (!%p6366_p1), [#allocation3], %s5811_s19  ;;  %s313_s10 = scalar_lea.vmem (!%p6366_p1), [#allocation2], %s5814_s2 }
  0x91   : > { %5498 = dma.done.wait (%p6367_p8), %s310_s21, 128  }
  0x92   : > { %5500 = vsyncadd (%p6367_p8), %s310_s21, 4294967168  ;;  %s318_s9 = sand.u32 1, %s5632_s28   ;;  %s6349_s15 = scalar_lea.vmem [#allocation5], %s5814_s2 }
  0x93   : > { %s319_s22 = scalar_lea.sflag [#allocation6], %s318_s9 }
  0x94   : > { %5502 = dma.done.wait (%p6367_p8), %s319_s22, 128  }
  0x95   : > { %5504 = vsyncadd (%p6367_p8), %s319_s22, 4294967168  ;;  %p6368_p11 = scmp.eq.s32.totalorder %s5632_s28, 0 }
  0x97   : > { %5506 = dma.done.wait (%p6368_p11), [#allocation6], 512   ;;  %p6369_p0 = pmov %p6368_p11 }
  0x99   : > { %5508 = vsyncadd (%p6369_p0), [#allocation6], 4294966784  ;;  %p6370_p9 = pmov %p6369_p0 }
  0x9a   : > { %p6371_p12 = pmov %p6369_p0 }
  0x9b   : > { %5510 = dma.done.wait (%p6370_p9), [#allocation9], 512  }
  0x9c   : > { %5512 = vsyncadd (%p6371_p12), [#allocation9], 4294966784  ;;  %v5543_v0 = vmov 0.0|0.0   ;;  %vm5544_vm0 = vmmov 0   ;;  %v5545_v1 = vmov 0.0   ;;  %v373_v2 = vld [vmem:[#allocation7] sm:$0xff] }
  0x9d   : > { %5097 = vmatprep.subr.bf16.mxu0 %v5543_v0  ;;  %5103 = vmatprep.subr.bf16.mxu1 %v5543_v0  ;;  %v374_v3 = vld [vmem:[#allocation7 + $0x8] sm:$0xff]  ;;  %v375_v4 = vld [vmem:[#allocation7 + $0x10] sm:$0xff]  ;;  %v376_v6 = vld [vmem:[#allocation7 + $0x18] sm:$0xff]  ;;  %vm385_vm1 = vcmask 261120   ;;  %s5546_s12 = smov 64   ;;  %s5547_s18 = smov 96  }
  0x9e   : > { %4843 = vmatprep.mubr.msk.f32.mxu0 %vm5544_vm0, %v5545_v1  ;;  %4854 = vmatprep.mubr.msk.f32.mxu1 %vm5544_vm0, %v5545_v1  ;;  %v5098_v5 = vpack.c.bf16 %v374_v3, %v373_v2  ;;  %v5101_v7 = vpack.c.bf16 %v376_v6, %v375_v4  ;;  %v5842_v8 = vld [vmem:[%s313_s10] sm:$0xff]  ;;  %v372_v9 = vld [vmem:[%s6349_s15] sm:$0xff]  ;;  %s5548_s4 = smov 92   ;;  %s5549_s23 = smov 124   ;;  %vm542_vm2 = vcmask 31744   ;;  %vm618_vm3 = vcmask 64512  }
  0x9f   : > { %v4639_v10 = vld [vmem:[%s6339_s3] ss:$0 sm:$0xff]  ;;  %s5550_s26 = smov 88   ;;  %s5551_s14 = smov 120   ;;  %vm711_vm4 = vcmask 1043456  }
  0xa0   : > { %5099 = vmatpush3.bf16.msra.mxu0 %v5098_v5  ;;  %5105 = vmatpush3.bf16.msra.mxu1 %v5098_v5  ;;  %v707_v35 = vld [vmem:[#allocation8] sm:$0xf]  ;;  %s5552_s20 = smov 56   ;;  %s5553_s11 = smov 84  }
  0xa1   : > { %5100 = vmatprep.subr.bf16.mxu0 %v5543_v0  ;;  %5106 = vmatprep.subr.bf16.mxu1 %v5543_v0  ;;  %s5554_s29 = smov 116   ;;  %s5555_s21 = smov 80  }
  0xa2   : > { %s5556_s10 = smov 112   ;;  %s5557_s9 = smov 48  }
  0xa3   : > { %s5558_s22 = smov 76   ;;  %s6352_s30 = smov 108  }
  0xa4   : > { %5102 = vmatpush3.bf16.msra.mxu0 %v5101_v7  ;;  %5108 = vmatpush3.bf16.msra.mxu1 %v5101_v7  ;;  %s6351_s17 = smov 72   ;;  %s6350_s15 = smov 104  }
  0xa5   : > { %4857 = vmatprep.subr.mxu1 %v5545_v1  ;;  %4867 = vmatprep.subr.mxu0 %v5545_v1  ;;  %p6375_p13 = scmp.ne.s32.totalorder %s6363_s16, 0 }
  0xa7   : > { %4844 = vmatmul.mubr.msk.f32.vlgmr.msra.gmra.mrb[0].mxu0 %vm385_vm1, %v5842_v8  ;;  %4855 = vmatmul.mubr.msk.f32.vlgmr.msra.gmra.mrb[0].mxu1 %vm385_vm1, %v372_v9 }
  0xa8   : > { %4859 = vmatprep.mubr.msk.f32.mxu1 %vm5544_vm0, %v5545_v1  ;;  %4869 = vmatprep.mubr.msk.f32.mxu0 %vm5544_vm0, %v5545_v1 }
  0xa9   : > { %4868 = vmatpush3.msk.msra.mxu0 %vm711_vm4, %v707_v35 }
  0xaa   : > { %4877 = vmatprep.subr.mxu0 %v5545_v1 }
 0x17a   : > { %v455_v11 = vpop.f32.mrb[0].mxu0  ;;  %v528_v12 = vpop.f32.mrb[0].mxu1 }
 0x17b   : > { %v5858_v13 = vadd.f32 %v4639_v10, %v455_v11  ;;  %v5860_v14 = vadd.f32 %v4639_v10, %v528_v12  ;;  %v4845_v15 = vpop.f32.mrb[1].mxu0  ;;  %v4856_v16 = vpop.f32.mrb[1].mxu1 }
 0x17d   : > { %631 = vrot.lane.b32.xlu1 %v5860_v14, %s5546_s12  ;;  %540 = vrot.lane.b32.xlu0 %v5858_v13, %s5547_s18 }
 0x181   : > { %788 = vrot.lane.b32.xlu1 %v5858_v13, %s5548_s4 }
 0x185   : > { %786 = vrot.lane.b32.xlu1 %v5858_v13, %s5549_s23 }
 0x189   : > { %1032 = vrot.lane.b32.xlu1 %v5858_v13, %s5550_s26 }
 0x1ef   : > { %v541_v17 = vpop.permute.xlu0 %540  ;;  %v632_v18 = vpop.permute.xlu1 %631 }
 0x1f0   : > { %4858 = vmatpush3.xpose.msk.msra.mxu1 %vm542_vm2, %v541_v17 }
 0x1f1   : > { %4862 = vmatprep.subr.mxu1 %v5545_v1 }
 0x1f3   : > { %4860 = vmatmul.mubr.msk.f32.vlgmr.msra.gmra.mrb[2].mxu1 %vm542_vm2, %v5858_v13  ;;  %v789_v28 = vpop.permute.xlu1 %788 }
 0x1f4   : > { %4863 = vmatpush3.msra.mxu1 %v632_v18  ;;  %4864 = vmatprep.mubr.msk.f32.mxu1 %vm5544_vm0, %v5545_v1 }
 0x1f5   : > { %4872 = vmatprep.subr.mxu1 %v5545_v1 }
 0x1f7   : > { %v787_v29 = vpop.permute.xlu1 %786 }
 0x1fb   : > { %v1033_v30 = vpop.permute.xlu1 %1032 }
 0x2c6   : > { %v613_v19 = vpop.f32.mrb[2].mxu1 }
 0x2c7   : > { %v617_v20 = vmul.f32 0.5, %v613_v19  ;;  %v4861_v21 = vpop.f32.mrb[3].mxu1 }
 0x2c9   : > { %v619_v22 = vsel %vm618_vm3, %v617_v20, -inf }
 0x2ca   : > { %620 = vmax.xlane.f32.xlu0 %v619_v22 }
 0x357   : > { %v621_v23 = vpop.xlane.xlu0 %620 }
 0x358   : > { %v622_v24 = vsub.f32 %v617_v20, %v621_v23 }
 0x35a   : > { %v623_v25 = vmul.f32 1.442695, %v622_v24 }
 0x35c   : > { %5244 = vpow2.f32 %v623_v25 }
 0x366   : > { %v5245_v26 = vpop.eup %5244 }
 0x367   : > { %v625_v27 = vsel %vm618_vm3, %v5245_v26, 0.0 }
 0x368   : > { %626 = vadd.xlane.f32.xlu1 %v625_v27 }
 0x379   : > { %1030 = vrot.lane.b32.xlu1 %v5858_v13, %s5551_s14 }
 0x3f5   : > { %v627_v31 = vpop.xlane.xlu1 %626 }
 0x3f6   : > { %5246 = vrcp.f32 %v627_v31 }
 0x3f9   : > { %v1031_v34 = vpop.permute.xlu1 %1030 }
 0x400   : > { %v5247_v32 = vpop.eup %5246 }
 0x401   : > { %v629_v33 = vmul.f32 %v5247_v32, %v5245_v26 }
 0x403   : > { %4865 = vmatmul.mubr.msk.f32.vlgmr.msra.gmra.mrb[4].mxu1 %vm618_vm3, %v629_v33 }
 0x404   : > { %4873 = vmatpush3.xpose.msk.msra.mxu1 %vm542_vm2, %v789_v28  ;;  %4874 = vmatprep.mubr.msk.f32.mxu1 %vm5544_vm0, %v5545_v1 }
 0x405   : > { %4887 = vmatprep.subr.mxu1 %v5545_v1 }
 0x407   : > { %4875 = vmatmul.mubr.msk.f32.vlgmr.msra.gmra.mrb[6].mxu1 %vm542_vm2, %v787_v29 }
 0x408   : > { %4888 = vmatpush3.xpose.msk.msra.mxu1 %vm542_vm2, %v1033_v30  ;;  %4889 = vmatprep.mubr.msk.f32.mxu1 %vm5544_vm0, %v5545_v1 }
 0x409   : > { %4892 = vmatprep.subr.mxu1 %v5545_v1 }
 0x40b   : > { %4890 = vmatmul.mubr.msk.f32.vlgmr.msra.gmra.mrb[8].mxu1 %vm542_vm2, %v1031_v34 }
 0x40c   : > { %4894 = vmatprep.mubr.msk.f32.mxu1 %vm5544_vm0, %v5545_v1 }
 0x4d6   : > { %v703_v36 = vpop.f32.mrb[4].mxu1 }
 0x4d7   : > { %v4866_v37 = vpop.f32.mrb[5].mxu1  ;;  %4870 = vmatmul.mubr.msk.f32.vlgmr.msra.gmra.mrb[2].mxu0 %vm542_vm2, %v703_v36 }
 0x4d8   : > { %4879 = vmatprep.mubr.msk.f32.mxu0 %vm5544_vm0, %v5545_v1 }
 0x4da   : > { %v5901_v38 = vpop.f32.mrb[6].mxu1 }
 0x4db   : > { %v4876_v39 = vpop.f32.mrb[7].mxu1  ;;  %v864_v31 = vmul.f32 0.5, %v5901_v38 }
 0x4dd   : > { %v865_v33 = vsel %vm618_vm3, %v864_v31, -inf }
 0x4de   : > { %v1104_v40 = vpop.f32.mrb[8].mxu1 }
 0x4df   : > { %v1108_v41 = vmul.f32 0.5, %v1104_v40  ;;  %v4891_v42 = vpop.f32.mrb[9].mxu1 }
 0x4e1   : > { %v1109_v43 = vsel %vm618_vm3, %v1108_v41, -inf }
 0x4e2   : > { %1110 = vmax.xlane.f32.xlu0 %v1109_v43 }
 0x4f8   : > { %1120 = vrot.lane.b32.xlu0 %v5860_v14, %s5552_s20 }
 0x4fc   : > { %1276 = vrot.lane.b32.xlu0 %v5858_v13, %s5553_s11 }
 0x500   : > { %1274 = vrot.lane.b32.xlu0 %v5858_v13, %s5554_s29 }
 0x504   : > { %1520 = vrot.lane.b32.xlu0 %v5858_v13, %s5555_s21 }
 0x508   : > { %1518 = vrot.lane.b32.xlu0 %v5858_v13, %s5556_s10 }
 0x56f   : > { %v1111_v44 = vpop.xlane.xlu0 %1110 }
 0x570   : > { %v1112_v45 = vsub.f32 %v1108_v41, %v1111_v44 }
 0x572   : > { %v1113_v46 = vmul.f32 1.442695, %v1112_v45 }
 0x573   : > { %v1121_v47 = vpop.permute.xlu0 %1120 }
 0x574   : > { %5248 = vpow2.f32 %v1113_v46  ;;  %4893 = vmatpush3.msra.mxu1 %v1121_v47 }
 0x575   : > { %4902 = vmatprep.subr.mxu1 %v5545_v1 }
 0x577   : > { %v1277_v51 = vpop.permute.xlu0 %1276 }
 0x57b   : > { %v1275_v52 = vpop.permute.xlu0 %1274 }
 0x57e   : > { %v5249_v48 = vpop.eup %5248 }
 0x57f   : > { %v1115_v49 = vsel %vm618_vm3, %v5249_v48, 0.0  ;;  %v1521_v55 = vpop.permute.xlu0 %1520 }
 0x580   : > { %1116 = vadd.xlane.f32.xlu1 %v1115_v49 }
 0x583   : > { %v1519_v56 = vpop.permute.xlu0 %1518 }
 0x60d   : > { %v1117_v50 = vpop.xlane.xlu1 %1116 }
 0x60e   : > { %5250 = vrcp.f32 %v1117_v50 }
 0x618   : > { %v5251_v53 = vpop.eup %5250 }
 0x619   : > { %v1119_v54 = vmul.f32 %v5251_v53, %v5249_v48 }
 0x61b   : > { %4895 = vmatmul.mubr.msk.f32.vlgmr.msra.gmra.mrb[10].mxu1 %vm618_vm3, %v1119_v54 }
 0x61c   : > { %4903 = vmatpush3.xpose.msk.msra.mxu1 %vm542_vm2, %v1277_v51  ;;  %4904 = vmatprep.mubr.msk.f32.mxu1 %vm5544_vm0, %v5545_v1 }
 0x61d   : > { %4917 = vmatprep.subr.mxu1 %v5545_v1 }
 0x61f   : > { %4905 = vmatmul.mubr.msk.f32.vlgmr.msra.gmra.mrb[12].mxu1 %vm542_vm2, %v1275_v52 }
 0x620   : > { %4918 = vmatpush3.xpose.msk.msra.mxu1 %vm542_vm2, %v1521_v55  ;;  %4919 = vmatprep.mubr.msk.f32.mxu1 %vm5544_vm0, %v5545_v1 }
 0x621   : > { %4922 = vmatprep.subr.mxu1 %v5545_v1 }
 0x623   : > { %4920 = vmatmul.mubr.msk.f32.vlgmr.msra.gmra.mrb[14].mxu1 %vm542_vm2, %v1519_v56 }
 0x624   : > { %4924 = vmatprep.mubr.msk.f32.mxu1 %vm5544_vm0, %v5545_v1 }
 0x6ee   : > { %v5929_v57 = vpop.f32.mrb[10].mxu1 }
 0x6ef   : > { %v4896_v58 = vpop.f32.mrb[11].mxu1 }
 0x6f2   : > { %v5931_v59 = vpop.f32.mrb[12].mxu1 }
 0x6f3   : > { %v4906_v60 = vpop.f32.mrb[13].mxu1 }
 0x6f6   : > { %v1592_v61 = vpop.f32.mrb[14].mxu1 }
 0x6f7   : > { %v1596_v62 = vmul.f32 0.5, %v1592_v61  ;;  %v4921_v63 = vpop.f32.mrb[15].mxu1 }
 0x6f9   : > { %v1597_v0 = vsel %vm618_vm3, %v1596_v62, -inf }
 0x6fa   : > { %1598 = vmax.xlane.f32.xlu1 %v1597_v0 }
 0x70b   : > { %1608 = vrot.lane.b32.xlu1 %v5860_v14, %s5557_s9 }
 0x70f   : > { %1764 = vrot.lane.b32.xlu1 %v5858_v13, %s5558_s22 }
 0x713   : > { %1762 = vrot.lane.b32.xlu1 %v5858_v13, %s6352_s30  ;;  %s5564_s30 = smov 100  }
 0x717   : > { %2008 = vrot.lane.b32.xlu1 %v5858_v13, %s6351_s17  ;;  %s5563_s17 = smov 68  }
 0x71b   : > { %2006 = vrot.lane.b32.xlu1 %v5858_v13, %s6350_s15  ;;  %s5562_s15 = smov 40  }
 0x787   : > { %v1599_v2 = vpop.xlane.xlu1 %1598 }
 0x788   : > { %v1600_v3 = vsub.f32 %v1596_v62, %v1599_v2  ;;  %v1352_v62 = vmul.f32 0.5, %v5931_v59 }
 0x78a   : > { %v1601_v4 = vmul.f32 1.442695, %v1600_v3  ;;  %v1353_v63 = vsel %vm618_vm3, %v1352_v62, -inf }
 0x78b   : > { %v1609_v5 = vpop.permute.xlu1 %1608 }
 0x78c   : > { %5252 = vpow2.f32 %v1601_v4  ;;  %4923 = vmatpush3.msra.mxu1 %v1609_v5 }
 0x78d   : > { %4932 = vmatprep.subr.mxu1 %v5545_v1 }
 0x78f   : > { %v1765_v10 = vpop.permute.xlu1 %1764 }
 0x793   : > { %v1763_v11 = vpop.permute.xlu1 %1762 }
 0x796   : > { %v5253_v6 = vpop.eup %5252 }
 0x797   : > { %v1603_v7 = vsel %vm618_vm3, %v5253_v6, 0.0  ;;  %v2009_v16 = vpop.permute.xlu1 %2008 }
 0x798   : > { %1604 = vadd.xlane.f32.xlu0 %v1603_v7 }
 0x79b   : > { %v2007_v17 = vpop.permute.xlu1 %2006 }
 0x825   : > { %v1605_v9 = vpop.xlane.xlu0 %1604 }
 0x826   : > { %5254 = vrcp.f32 %v1605_v9 }
 0x830   : > { %v5255_v12 = vpop.eup %5254 }
 0x831   : > { %v1607_v15 = vmul.f32 %v5255_v12, %v5253_v6 }
 0x833   : > { %4925 = vmatmul.mubr.msk.f32.vlgmr.msra.gmra.mrb[16].mxu1 %vm618_vm3, %v1607_v15 }
 0x834   : > { %4933 = vmatpush3.xpose.msk.msra.mxu1 %vm542_vm2, %v1765_v10  ;;  %4934 = vmatprep.mubr.msk.f32.mxu1 %vm5544_vm0, %v5545_v1 }
 0x835   : > { %4947 = vmatprep.subr.mxu1 %v5545_v1 }
 0x837   : > { %4935 = vmatmul.mubr.msk.f32.vlgmr.msra.gmra.mrb[18].mxu1 %vm542_vm2, %v1763_v11 }
 0x838   : > { %4948 = vmatpush3.xpose.msk.msra.mxu1 %vm542_vm2, %v2009_v16  ;;  %4949 = vmatprep.mubr.msk.f32.mxu1 %vm5544_vm0, %v5545_v1 }
 0x839   : > { %4952 = vmatprep.subr.mxu1 %v5545_v1 }
 0x83b   : > { %4950 = vmatmul.mubr.msk.f32.vlgmr.msra.gmra.mrb[20].mxu1 %vm542_vm2, %v2007_v17 }
 0x83c   : > { %4954 = vmatprep.mubr.msk.f32.mxu1 %vm5544_vm0, %v5545_v1 }
 0x906   : > { %v5959_v18 = vpop.f32.mrb[16].mxu1 }
 0x907   : > { %v4926_v19 = vpop.f32.mrb[17].mxu1 }
 0x908   : > { %v952_v19 = vld [vmem:[#allocation8 + $0x4] sm:$0xf] }
 0x90a   : > { %v5961_v20 = vpop.f32.mrb[18].mxu1 }
 0x90b   : > { %v4936_v21 = vpop.f32.mrb[19].mxu1 }
 0x90e   : > { %v2080_v22 = vpop.f32.mrb[20].mxu1 }
 0x90f   : > { %v2084_v23 = vmul.f32 0.5, %v2080_v22  ;;  %v4951_v24 = vpop.f32.mrb[21].mxu1  ;;  %v1196_v22 = vld [vmem:[#allocation8 + $0x8] sm:$0xf] }
 0x911   : > { %v2085_v25 = vsel %vm618_vm3, %v2084_v23, -inf }
 0x912   : > { %2086 = vmax.xlane.f32.xlu0 %v2085_v25 }
 0x928   : > { %2096 = vrot.lane.b32.xlu0 %v5860_v14, %s5562_s15 }
 0x92c   : > { %2252 = vrot.lane.b32.xlu0 %v5858_v13, %s5563_s17 }
 0x930   : > { %2250 = vrot.lane.b32.xlu0 %v5858_v13, %s5564_s30 }
 0x934   : > { %2496 = vrot.lane.b32.xlu0 %v5860_v14, %s5547_s18  ;;  %s5566_s18 = smov 52  }
 0x99f   : > { %v2087_v26 = vpop.xlane.xlu0 %2086 }
 0x9a0   : > { %v2088_v27 = vsub.f32 %v2084_v23, %v2087_v26 }
 0x9a2   : > { %v2089_v28 = vmul.f32 1.442695, %v2088_v27 }
 0x9a3   : > { %v2097_v29 = vpop.permute.xlu0 %2096 }
 0x9a4   : > { %5256 = vpow2.f32 %v2089_v28  ;;  %4953 = vmatpush3.msra.mxu1 %v2097_v29 }
 0x9a5   : > { %4962 = vmatprep.subr.mxu1 %v5545_v1 }
 0x9a7   : > { %v2253_v37 = vpop.permute.xlu0 %2252 }
 0x9ab   : > { %v2251_v41 = vpop.permute.xlu0 %2250 }
 0x9ae   : > { %v5257_v30 = vpop.eup %5256 }
 0x9af   : > { %v2091_v32 = vsel %vm618_vm3, %v5257_v30, 0.0  ;;  %v2497_v38 = vpop.permute.xlu0 %2496 }
 0x9b0   : > { %2092 = vadd.xlane.f32.xlu1 %v2091_v32 }
 0x9b4   : > { %866 = vmax.xlane.f32.xlu1 %v865_v33 }
 0xa3d   : > { %v2093_v34 = vpop.xlane.xlu1 %2092 }
 0xa3e   : > { %5258 = vrcp.f32 %v2093_v34 }
 0xa41   : > { %v867_v35 = vpop.xlane.xlu1 %866 }
 0xa42   : > { %v868_v36 = vsub.f32 %v864_v31, %v867_v35  ;;  %v1840_v35 = vmul.f32 0.5, %v5961_v20 }
 0xa44   : > { %v869_v39 = vmul.f32 1.442695, %v868_v36  ;;  %v1841_v36 = vsel %vm618_vm3, %v1840_v35, -inf }
 0xa46   : > { %5260 = vpow2.f32 %v869_v39 }
 0xa48   : > { %v5259_v40 = vpop.eup %5258 }
 0xa49   : > { %v2095_v42 = vmul.f32 %v5259_v40, %v5257_v30 }
 0xa4b   : > { %4955 = vmatmul.mubr.msk.f32.vlgmr.msra.gmra.mrb[22].mxu1 %vm618_vm3, %v2095_v42 }
 0xa4c   : > { %4963 = vmatpush3.xpose.msk.msra.mxu1 %vm542_vm2, %v2253_v37  ;;  %4964 = vmatprep.mubr.msk.f32.mxu1 %vm5544_vm0, %v5545_v1  ;;  %v1440_v37 = vld [vmem:[#allocation8 + $0xc] sm:$0xf] }
 0xa4d   : > { %4977 = vmatprep.subr.mxu1 %v5545_v1 }
 0xa4f   : > { %4965 = vmatmul.mubr.msk.f32.vlgmr.msra.gmra.mrb[24].mxu1 %vm542_vm2, %v2251_v41 }
 0xa50   : > { %v5261_v43 = vpop.eup %5260  ;;  %4978 = vmatpush3.xpose.msk.msra.mxu1 %vm542_vm2, %v2497_v38  ;;  %4979 = vmatprep.mubr.msk.f32.mxu1 %vm5544_vm0, %v5545_v1 }
 0xa51   : > { %v871_v44 = vsel %vm618_vm3, %v5261_v43, 0.0  ;;  %4982 = vmatprep.subr.mxu1 %v5545_v1 }
 0xa52   : > { %872 = vadd.xlane.f32.xlu1 %v871_v44 }
 0xa53   : > { %4980 = vmatmul.mubr.msk.f32.vlgmr.msra.gmra.mrb[26].mxu1 %vm542_vm2, %v5860_v14 }
 0xa54   : > { %4984 = vmatprep.mubr.msk.f32.mxu1 %vm5544_vm0, %v5545_v1 }
 0xa63   : > { %2584 = vrot.lane.b32.xlu1 %v5858_v13, %s5546_s12  ;;  %s5565_s12 = smov 60  }
 0xa67   : > { %2740 = vrot.lane.b32.xlu1 %v5860_v14, %s5548_s4  ;;  %s5567_s4 = smov 44  }
 0xa6b   : > { %2984 = vrot.lane.b32.xlu1 %v5860_v14, %s5550_s26  ;;  %s6372_s26 = smov 108  }
 0xadf   : > { %v873_v45 = vpop.xlane.xlu1 %872 }
 0xae3   : > { %v2585_v46 = vpop.permute.xlu1 %2584 }
 0xae4   : > { %4983 = vmatpush3.msra.mxu1 %v2585_v46 }
 0xae5   : > { %4992 = vmatprep.subr.mxu1 %v5545_v1 }
 0xae7   : > { %v2741_v59 = vpop.permute.xlu1 %2740 }
 0xaeb   : > { %v2985_v0 = vpop.permute.xlu1 %2984 }
 0xb1e   : > { %v5998_v47 = vpop.f32.mrb[22].mxu1 }
 0xb1f   : > { %v4956_v48 = vpop.f32.mrb[23].mxu1 }
 0xb20   : > { %v1684_v48 = vld [vmem:[#allocation8 + $0x10] sm:$0xf] }
 0xb22   : > { %v6000_v49 = vpop.f32.mrb[24].mxu1 }
 0xb23   : > { %v4966_v50 = vpop.f32.mrb[25].mxu1 }
 0xb26   : > { %v2568_v51 = vpop.f32.mrb[26].mxu1 }
 0xb27   : > { %v2572_v52 = vmul.f32 0.5, %v2568_v51  ;;  %v4981_v53 = vpop.f32.mrb[27].mxu1 }
 0xb29   : > { %v2573_v54 = vsel %vm618_vm3, %v2572_v52, -inf }
 0xb2a   : > { %2574 = vmax.xlane.f32.xlu0 %v2573_v54 }
 0xb40   : > { %2738 = vrot.lane.b32.xlu0 %v5860_v14, %s5549_s23  ;;  %s5568_s23 = smov 36  }
 0xbb7   : > { %v2575_v55 = vpop.xlane.xlu0 %2574 }
 0xbb8   : > { %v2576_v56 = vsub.f32 %v2572_v52, %v2575_v55  ;;  %v2328_v52 = vmul.f32 0.5, %v6000_v49 }
 0xbba   : > { %v2577_v58 = vmul.f32 1.442695, %v2576_v56  ;;  %v2329_v53 = vsel %vm618_vm3, %v2328_v52, -inf }
 0xbbb   : > { %v2739_v10 = vpop.permute.xlu0 %2738 }
 0xbbc   : > { %5262 = vpow2.f32 %v2577_v58 }
 0xbbd   : > { %5264 = vrcp.f32 %v873_v45 }
 0xbc6   : > { %v5263_v60 = vpop.eup %5262 }
 0xbc7   : > { %v2579_v61 = vsel %vm618_vm3, %v5263_v60, 0.0  ;;  %v5265_v4 = vpop.eup %5264 }
 0xbc8   : > { %2580 = vadd.xlane.f32.xlu1 %v2579_v61  ;;  %v875_v5 = vmul.f32 %v5265_v4, %v5261_v43 }
 0xbd9   : > { %2982 = vrot.lane.b32.xlu1 %v5860_v14, %s5551_s14  ;;  %s6374_s14 = smov 104  }
 0xbdd   : > { %876 = vrot.lane.b32.xlu1 %v5860_v14, %s5565_s12 }
 0xc01   : > { %1354 = vmax.xlane.f32.xlu1 %v1353_v63 }
 0xc12   : > { %1364 = vrot.lane.b32.xlu1 %v5860_v14, %s5566_s18 }
 0xc16   : > { %3228 = vrot.lane.b32.xlu1 %v5860_v14, %s5553_s11 }
 0xc1a   : > { %3226 = vrot.lane.b32.xlu1 %v5860_v14, %s5554_s29  ;;  %s363_s29 = scalar_lea.vmem [#allocation10], %s5814_s2 }
 0xc1e   : > { %3472 = vrot.lane.b32.xlu1 %v5860_v14, %s5555_s21  ;;  %s4725_s21 = sshll.u32 %s5632_s28, 7 }
 0xc22   : > { %3470 = vrot.lane.b32.xlu1 %v5860_v14, %s5556_s10 }
 0xc55   : > { %v2581_v2 = vpop.xlane.xlu1 %2580 }
 0xc56   : > { %5266 = vrcp.f32 %v2581_v2 }
 0xc59   : > { %v2983_v3 = vpop.permute.xlu1 %2982 }
 0xc5d   : > { %v877_v6 = vpop.permute.xlu1 %876 }
 0xc5e   : > { %4878 = vmatpush3.msra.mxu0 %v877_v6 }
 0xc5f   : > { %4880 = vmatmul.mubr.msk.f32.vlgmr.msra.gmra.mrb[4].mxu0 %vm618_vm3, %v875_v5  ;;  %4882 = vmatprep.subr.mxu0 %v5545_v1 }
 0xc60   : > { %v5267_v7 = vpop.eup %5266  ;;  %4884 = vmatprep.mubr.msk.f32.mxu0 %vm5544_vm0, %v5545_v1  ;;  %4883 = vmatpush3.msk.msra.mxu0 %vm711_vm4, %v952_v19 }
 0xc61   : > { %v2583_v9 = vmul.f32 %v5267_v7, %v5263_v60  ;;  %4897 = vmatprep.subr.mxu0 %v5545_v1  ;;  %v1928_v7 = vld [vmem:[#allocation8 + $0x14] sm:$0xf] }
 0xc63   : > { %4985 = vmatmul.mubr.msk.f32.vlgmr.msra.gmra.mrb[28].mxu1 %vm618_vm3, %v2583_v9 }
 0xc64   : > { %4993 = vmatpush3.xpose.msk.msra.mxu1 %vm542_vm2, %v2741_v59  ;;  %4994 = vmatprep.mubr.msk.f32.mxu1 %vm5544_vm0, %v5545_v1 }
 0xc65   : > { %5007 = vmatprep.subr.mxu1 %v5545_v1 }
 0xc67   : > { %4995 = vmatmul.mubr.msk.f32.vlgmr.msra.gmra.mrb[30].mxu1 %vm542_vm2, %v2739_v10 }
 0xc68   : > { %5008 = vmatpush3.xpose.msk.msra.mxu1 %vm542_vm2, %v2985_v0  ;;  %5009 = vmatprep.mubr.msk.f32.mxu1 %vm5544_vm0, %v5545_v1 }
 0xc69   : > { %5012 = vmatprep.subr.mxu1 %v5545_v1 }
 0xc6b   : > { %5010 = vmatmul.mubr.msk.f32.vlgmr.msra.gmra.mrb[32].mxu1 %vm542_vm2, %v2983_v3 }
 0xc6c   : > { %5014 = vmatprep.mubr.msk.f32.mxu1 %vm5544_vm0, %v5545_v1 }
 0xc8e   : > { %v1355_v11 = vpop.xlane.xlu1 %1354 }
 0xc8f   : > { %v1356_v12 = vsub.f32 %v1352_v62, %v1355_v11 }
 0xc91   : > { %v1357_v15 = vmul.f32 1.442695, %v1356_v12 }
 0xc92   : > { %v1365_v29 = vpop.permute.xlu1 %1364 }
 0xc93   : > { %5268 = vpow2.f32 %v1357_v15 }
 0xc96   : > { %v3229_v54 = vpop.permute.xlu1 %3228 }
 0xc9a   : > { %v3227_v55 = vpop.permute.xlu1 %3226 }
 0xc9d   : > { %v5269_v16 = vpop.eup %5268 }
 0xc9e   : > { %v1359_v17 = vsel %vm618_vm3, %v5269_v16, 0.0  ;;  %v3473_v56 = vpop.permute.xlu1 %3472 }
 0xc9f   : > { %1360 = vadd.xlane.f32.xlu0 %v1359_v17 }
 0xca2   : > { %v3471_v49 = vpop.permute.xlu1 %3470 }
 0xd2c   : > { %v1361_v21 = vpop.xlane.xlu0 %1360 }
 0xd2d   : > { %5270 = vrcp.f32 %v1361_v21 }
 0xd32   : > { %v948_v23 = vpop.f32.mrb[4].mxu0 }
 0xd33   : > { %v4881_v24 = vpop.f32.mrb[5].mxu0  ;;  %4885 = vmatmul.mubr.msk.f32.vlgmr.msra.gmra.mrb[2].mxu0 %vm542_vm2, %v948_v23 }
 0xd34   : > { %4898 = vmatpush3.msk.msra.mxu0 %vm711_vm4, %v1196_v22  ;;  %4899 = vmatprep.mubr.msk.f32.mxu0 %vm5544_vm0, %v5545_v1 }
 0xd35   : > { %4907 = vmatprep.subr.mxu0 %v5545_v1 }
 0xd36   : > { %v6047_v25 = vpop.f32.mrb[28].mxu1 }
 0xd37   : > { %v4986_v26 = vpop.f32.mrb[29].mxu1  ;;  %v5271_v27 = vpop.eup %5270 }
 0xd38   : > { %v1363_v31 = vmul.f32 %v5271_v27, %v5269_v16  ;;  %v2172_v16 = vld [vmem:[#allocation8 + $0x18] sm:$0xf] }
 0xd3a   : > { %v6049_v28 = vpop.f32.mrb[30].mxu1 }
 0xd3b   : > { %4900 = vmatmul.mubr.msk.f32.vlgmr.msra.gmra.mrb[2].mxu0 %vm542_vm2, %v5929_v57  ;;  %v4996_v30 = vpop.f32.mrb[31].mxu1  ;;  %v2816_v9 = vmul.f32 0.5, %v6049_v28 }
 0xd3c   : > { %4908 = vmatpush3.msra.mxu0 %v1365_v29  ;;  %4909 = vmatprep.mubr.msk.f32.mxu0 %vm5544_vm0, %v5545_v1 }
 0xd3d   : > { %4912 = vmatprep.subr.mxu0 %v5545_v1  ;;  %v2817_v10 = vsel %vm618_vm3, %v2816_v9, -inf }
 0xd3e   : > { %v3056_v32 = vpop.f32.mrb[32].mxu1 }
 0xd3f   : > { %v3060_v33 = vmul.f32 0.5, %v3056_v32  ;;  %4910 = vmatmul.mubr.msk.f32.vlgmr.msra.gmra.mrb[6].mxu0 %vm618_vm3, %v1363_v31  ;;  %v5011_v34 = vpop.f32.mrb[33].mxu1 }
 0xd40   : > { %4914 = vmatprep.mubr.msk.f32.mxu0 %vm5544_vm0, %v5545_v1  ;;  %4913 = vmatpush3.msk.msra.mxu0 %vm711_vm4, %v1440_v37 }
 0xd41   : > { %v3061_v57 = vsel %vm618_vm3, %v3060_v33, -inf  ;;  %4927 = vmatprep.subr.mxu0 %v5545_v1 }
 0xd42   : > { %3062 = vmax.xlane.f32.xlu0 %v3061_v57 }
 0xd46   : > { %1842 = vmax.xlane.f32.xlu0 %v1841_v36 }
 0xdcf   : > { %v3063_v39 = vpop.xlane.xlu0 %3062 }
 0xdd0   : > { %v3064_v40 = vsub.f32 %v3060_v33, %v3063_v39 }
 0xdd2   : > { %v3065_v41 = vmul.f32 1.442695, %v3064_v40 }
 0xdd3   : > { %v1843_v42 = vpop.xlane.xlu0 %1842 }
 0xdd4   : > { %5272 = vpow2.f32 %v3065_v41  ;;  %v1844_v38 = vsub.f32 %v1840_v35, %v1843_v42 }
 0xdd6   : > { %v1845_v43 = vmul.f32 1.442695, %v1844_v38 }
 0xdd8   : > { %5274 = vpow2.f32 %v1845_v43  ;;  %v2660_v43 = vld [vmem:[#allocation8] sm:$0xf] }
 0xdde   : > { %v5273_v20 = vpop.eup %5272 }
 0xddf   : > { %v3067_v44 = vsel %vm618_vm3, %v5273_v20, 0.0 }
 0xde0   : > { %3068 = vadd.xlane.f32.xlu0 %v3067_v44 }
 0xde2   : > { %v5275_v45 = vpop.eup %5274 }
 0xde3   : > { %v1847_v46 = vsel %vm618_vm3, %v5275_v45, 0.0 }
 0xde4   : > { %1848 = vadd.xlane.f32.xlu1 %v1847_v46 }
 0xdf6   : > { %3072 = vrot.lane.b32.xlu0 %v5858_v13, %s5552_s20 }
 0xdfa   : > { %1852 = vrot.lane.b32.xlu0 %v5860_v14, %s5567_s4 }
 0xe12   : > { %v1436_v50 = vpop.f32.mrb[6].mxu0 }
 0xe13   : > { %v4911_v51 = vpop.f32.mrb[7].mxu0  ;;  %4915 = vmatmul.mubr.msk.f32.vlgmr.msra.gmra.mrb[2].mxu0 %vm542_vm2, %v1436_v50 }
 0xe14   : > { %4928 = vmatpush3.msk.msra.mxu0 %vm711_vm4, %v1684_v48  ;;  %4929 = vmatprep.mubr.msk.f32.mxu0 %vm5544_vm0, %v5545_v1 }
 0xe15   : > { %4937 = vmatprep.subr.mxu0 %v5545_v1 }
 0xe19   : > { %2330 = vmax.xlane.f32.xlu0 %v2329_v53 }
 0xe1b   : > { %4930 = vmatmul.mubr.msk.f32.vlgmr.msra.gmra.mrb[2].mxu0 %vm542_vm2, %v5959_v18 }
 0xe1c   : > { %4939 = vmatprep.mubr.msk.f32.mxu0 %vm5544_vm0, %v5545_v1 }
 0xe6d   : > { %v3069_v58 = vpop.xlane.xlu0 %3068 }
 0xe6e   : > { %5276 = vrcp.f32 %v3069_v58  ;;  %v6179_v58 = vld [vmem:[%s6341_s5] ss:$0 sm:$0xff] }
 0xe71   : > { %v1849_v60 = vpop.xlane.xlu1 %1848  ;;  %v3073_v61 = vpop.permute.xlu0 %3072 }
 0xe72   : > { %5278 = vrcp.f32 %v1849_v60  ;;  %5013 = vmatpush3.msra.mxu1 %v3073_v61  ;;  %v538_v60 = vadd.f32 %v6179_v58, %v5842_v8 }
 0xe73   : > { %5022 = vmatprep.subr.mxu1 %v5545_v1 }
 0xe75   : > { %v1853_v62 = vpop.permute.xlu0 %1852 }
 0xe76   : > { %4938 = vmatpush3.msra.mxu0 %v1853_v62 }
 0xe77   : > { %4942 = vmatprep.subr.mxu0 %v5545_v1 }
 0xe78   : > { %v5277_v18 = vpop.eup %5276 }
 0xe79   : > { %v3071_v63 = vmul.f32 %v5277_v18, %v5273_v20 }
 0xe7b   : > { %5015 = vmatmul.mubr.msk.f32.vlgmr.msra.gmra.mrb[34].mxu1 %vm618_vm3, %v3071_v63  ;;  %v2904_v63 = vld [vmem:[#allocation8 + $0x4] sm:$0xf] }
 0xe7c   : > { %v5279_v59 = vpop.eup %5278  ;;  %5023 = vmatpush3.xpose.msk.msra.mxu1 %vm542_vm2, %v3229_v54  ;;  %5024 = vmatprep.mubr.msk.f32.mxu1 %vm5544_vm0, %v5545_v1 }
 0xe7d   : > { %v1851_v0 = vmul.f32 %v5279_v59, %v5275_v45  ;;  %5037 = vmatprep.subr.mxu1 %v5545_v1 }
 0xe7f   : > { %4940 = vmatmul.mubr.msk.f32.vlgmr.msra.gmra.mrb[8].mxu0 %vm618_vm3, %v1851_v0  ;;  %5025 = vmatmul.mubr.msk.f32.vlgmr.msra.gmra.mrb[36].mxu1 %vm542_vm2, %v3227_v55 }
 0xe80   : > { %5038 = vmatpush3.xpose.msk.msra.mxu1 %vm542_vm2, %v3473_v56  ;;  %5039 = vmatprep.mubr.msk.f32.mxu1 %vm5544_vm0, %v5545_v1 }
 0xe81   : > { %4944 = vmatprep.mubr.msk.f32.mxu0 %vm5544_vm0, %v5545_v1  ;;  %5042 = vmatprep.subr.mxu1 %v5545_v1 }
 0xe82   : > { %4943 = vmatpush3.msk.msra.mxu0 %vm711_vm4, %v1928_v7 }
 0xe83   : > { %5040 = vmatmul.mubr.msk.f32.vlgmr.msra.gmra.mrb[38].mxu1 %vm542_vm2, %v3471_v49  ;;  %4957 = vmatprep.subr.mxu0 %v5545_v1 }
 0xe84   : > { %5044 = vmatprep.mubr.msk.f32.mxu1 %vm5544_vm0, %v5545_v1 }
 0xea6   : > { %v2331_v2 = vpop.xlane.xlu0 %2330 }
 0xea7   : > { %v2332_v3 = vsub.f32 %v2328_v52, %v2331_v2 }
 0xea9   : > { %v2333_v4 = vmul.f32 1.442695, %v2332_v3 }
 0xeab   : > { %5280 = vpow2.f32 %v2333_v4 }
 0xeb5   : > { %v5281_v5 = vpop.eup %5280 }
 0xeb6   : > { %v2335_v6 = vsel %vm618_vm3, %v5281_v5, 0.0 }
 0xeb7   : > { %2336 = vadd.xlane.f32.xlu1 %v2335_v6 }
 0xec8   : > { %2340 = vrot.lane.b32.xlu1 %v5860_v14, %s5568_s23 }
 0xeec   : > { %2818 = vmax.xlane.f32.xlu1 %v2817_v10 }
 0xefd   : > { %2828 = vrot.lane.b32.xlu1 %v5858_v13, %s5565_s12 }
 0xf44   : > { %v2337_v11 = vpop.xlane.xlu1 %2336 }
 0xf45   : > { %5282 = vrcp.f32 %v2337_v11 }
 0xf48   : > { %v2341_v31 = vpop.permute.xlu1 %2340 }
 0xf4e   : > { %v6108_v12 = vpop.f32.mrb[34].mxu1 }
 0xf4f   : > { %v5016_v15 = vpop.f32.mrb[35].mxu1  ;;  %v5283_v30 = vpop.eup %5282 }
 0xf50   : > { %v2339_v32 = vmul.f32 %v5283_v30, %v5281_v5 }
 0xf52   : > { %v1924_v17 = vpop.f32.mrb[8].mxu0  ;;  %v3300_v19 = vpop.f32.mrb[36].mxu1 }
 0xf53   : > { %v6110_v21 = vmul.f32 0.5, %v3300_v19  ;;  %v4941_v22 = vpop.f32.mrb[9].mxu0  ;;  %4945 = vmatmul.mubr.msk.f32.vlgmr.msra.gmra.mrb[2].mxu0 %vm542_vm2, %v1924_v17  ;;  %v5026_v23 = vpop.f32.mrb[37].mxu1  ;;  %v3148_v17 = vld [vmem:[#allocation8 + $0x8] sm:$0xf] }
 0xf54   : > { %4958 = vmatpush3.msk.msra.mxu0 %vm711_vm4, %v2172_v16  ;;  %4959 = vmatprep.mubr.msk.f32.mxu0 %vm5544_vm0, %v5545_v1 }
 0xf55   : > { %v3305_v24 = vsel %vm618_vm3, %v6110_v21, -inf  ;;  %4967 = vmatprep.subr.mxu0 %v5545_v1 }
 0xf56   : > { %3306 = vmax.xlane.f32.xlu1 %v3305_v24  ;;  %v3544_v26 = vpop.f32.mrb[38].mxu1 }
 0xf57   : > { %v3548_v27 = vmul.f32 0.5, %v3544_v26  ;;  %v5041_v28 = vpop.f32.mrb[39].mxu1 }
 0xf59   : > { %v3549_v29 = vsel %vm618_vm3, %v3548_v27, -inf }
 0xf5a   : > { %3550 = vmax.xlane.f32.xlu0 %v3549_v29 }
 0xf5b   : > { %4960 = vmatmul.mubr.msk.f32.vlgmr.msra.gmra.mrb[2].mxu0 %vm542_vm2, %v5998_v47  ;;  %v2416_v47 = vld [vmem:[#allocation8 + $0x1c] sm:$0xf] }
 0xf5c   : > { %4968 = vmatpush3.msra.mxu0 %v2341_v31  ;;  %4969 = vmatprep.mubr.msk.f32.mxu0 %vm5544_vm0, %v5545_v1 }
 0xf5d   : > { %4972 = vmatprep.subr.mxu0 %v5545_v1 }
 0xf5f   : > { %4970 = vmatmul.mubr.msk.f32.vlgmr.msra.gmra.mrb[10].mxu0 %vm618_vm3, %v2339_v32 }
 0xf60   : > { %4974 = vmatprep.mubr.msk.f32.mxu0 %vm5544_vm0, %v5545_v1  ;;  %4973 = vmatpush3.msk.msra.mxu0 %vm711_vm4, %v2416_v47 }
 0xf61   : > { %4987 = vmatprep.subr.mxu0 %v5545_v1 }
 0xf67   : > { %4048 = vrot.lane.b32.xlu1 %v5858_v13, %s5562_s15  ;;  %s6373_s15 = smov 72  }
 0xf6b   : > { %4204 = vrot.lane.b32.xlu1 %v5860_v14, %s5563_s17  ;;  %s4448_s17 = scalar_lea.sflag [#allocation4], %s5811_s19 }
 0xf6f   : > { %4202 = vrot.lane.b32.xlu1 %v5860_v14, %s5564_s30  ;;  %s4466_s30 = sshll.u32 %s363_s29, 4  ;;  %s4467_s30 = int_to_ptr.vmem [resolvable:$true] %s4466_s30 }
 0xf70   : > { %3560 = vrot.lane.b32.xlu0 %v5858_v13, %s5557_s9  ;;  %s5425_s12 = scalar_lea.vmem %s4467_s30, 128 }
 0xf71   : > { %p5426_p2 = scmp.ne.s32.totalorder %s4467_s30, %s5425_s12 }
 0xf73   : > { %p5427_p6 = pnand %p5426_p2, %p6375_p13 }
 0xf74   : > { %3716 = vrot.lane.b32.xlu0 %v5860_v14, %s5558_s22  ;;  %s6260_s22 = scalar_lea.hbm %s6342_s6, %s4725_s21 }
 0xf75   : > { %p5428_p10 = pneg %p5427_p6 }
 0xf78   : > { %3714 = vrot.lane.b32.xlu0 %v5860_v14, %s6372_s26 }
 0xf79   : > { %v2819_v39 = vpop.xlane.xlu1 %2818 }
 0xf7a   : > { %v2820_v40 = vsub.f32 %v2816_v9, %v2819_v39 }
 0xf7c   : > { %v2821_v41 = vmul.f32 1.442695, %v2820_v40 }
 0xfe7   : > { %v3551_v33 = vpop.xlane.xlu0 %3550 }
 0xfe8   : > { %v3552_v34 = vsub.f32 %v3548_v27, %v3551_v33 }
 0xfea   : > { %v3553_v35 = vmul.f32 1.442695, %v3552_v34 }
 0xfeb   : > { %v3561_v57 = vpop.permute.xlu0 %3560 }
 0xfec   : > { %5284 = vpow2.f32 %v3553_v35  ;;  %5043 = vmatpush3.msra.mxu1 %v3561_v57 }
 0xfed   : > { %5052 = vmatprep.subr.mxu1 %v5545_v1  ;;  %5286 = vpow2.f32 %v2821_v41 }
 0xfef   : > { %v3717_v45 = vpop.permute.xlu0 %3716 }
 0xff3   : > { %v3715_v46 = vpop.permute.xlu0 %3714 }
 0xff6   : > { %v5285_v36 = vpop.eup %5284 }
 0xff7   : > { %v3555_v37 = vsel %vm618_vm3, %v5285_v36, 0.0  ;;  %v5287_v42 = vpop.eup %5286 }
 0xff8   : > { %3556 = vadd.xlane.f32.xlu0 %v3555_v37  ;;  %v2823_v38 = vsel %vm618_vm3, %v5287_v42, 0.0 }
0x100e   : > { %3960 = vrot.lane.b32.xlu0 %v5860_v14, %s6373_s15 }
0x1012   : > { %3958 = vrot.lane.b32.xlu0 %v5860_v14, %s6374_s14  ;;  %v2829_v14 = vpop.permute.xlu1 %2828 }
0x1031   : > { %2824 = vadd.xlane.f32.xlu0 %v2823_v38 }
0x1032   : > { %v2412_v20 = vpop.f32.mrb[10].mxu0 }
0x1033   : > { %v4971_v44 = vpop.f32.mrb[11].mxu0  ;;  %4975 = vmatmul.mubr.msk.f32.vlgmr.msra.gmra.mrb[2].mxu0 %vm542_vm2, %v2412_v20 }
0x1034   : > { %4988 = vmatpush3.msk.msra.mxu0 %vm711_vm4, %v2660_v43  ;;  %4989 = vmatprep.mubr.msk.f32.mxu0 %vm5544_vm0, %v5545_v1 }
0x1035   : > { %4997 = vmatprep.subr.mxu0 %v5545_v1 }
0x1037   : > { %4990 = vmatmul.mubr.msk.f32.vlgmr.msra.gmra.mrb[12].mxu0 %vm542_vm2, %v6047_v25  ;;  %v3307_v25 = vpop.xlane.xlu1 %3306 }
0x1038   : > { %4998 = vmatpush3.msra.mxu0 %v2829_v14  ;;  %4999 = vmatprep.mubr.msk.f32.mxu0 %vm5544_vm0, %v5545_v1  ;;  %v3308_v59 = vsub.f32 %v6110_v21, %v3307_v25 }
0x1039   : > { %5002 = vmatprep.subr.mxu0 %v5545_v1 }
0x103a   : > { %v3309_v0 = vmul.f32 1.442695, %v3308_v59 }
0x103b   : > { %v4049_v54 = vpop.permute.xlu1 %4048 }
0x103f   : > { %v4205_v22 = vpop.permute.xlu1 %4204 }
0x1043   : > { %v4203_v23 = vpop.permute.xlu1 %4202 }
0x1085   : > { %v3557_v48 = vpop.xlane.xlu0 %3556 }
0x1086   : > { %5288 = vrcp.f32 %v3557_v48 }
0x1089   : > { %v3961_v52 = vpop.permute.xlu0 %3960 }
0x108d   : > { %v3959_v53 = vpop.permute.xlu0 %3958 }
0x1090   : > { %v5289_v50 = vpop.eup %5288 }
0x1091   : > { %v3559_v51 = vmul.f32 %v5289_v50, %v5285_v36  ;;  %v3392_v36 = vld [vmem:[#allocation8 + $0xc] sm:$0xf] }
0x1093   : > { %5045 = vmatmul.mubr.msk.f32.vlgmr.msra.gmra.mrb[40].mxu1 %vm618_vm3, %v3559_v51 }
0x1094   : > { %5053 = vmatpush3.xpose.msk.msra.mxu1 %vm542_vm2, %v3717_v45  ;;  %5054 = vmatprep.mubr.msk.f32.mxu1 %vm5544_vm0, %v5545_v1  ;;  %v3880_v45 = vld [vmem:[#allocation8 + $0x14] sm:$0xf] }
0x1095   : > { %5067 = vmatprep.subr.mxu1 %v5545_v1 }
0x1097   : > { %5055 = vmatmul.mubr.msk.f32.vlgmr.msra.gmra.mrb[42].mxu1 %vm542_vm2, %v3715_v46 }
0x1098   : > { %5068 = vmatpush3.xpose.msk.msra.mxu1 %vm542_vm2, %v3961_v52  ;;  %5069 = vmatprep.mubr.msk.f32.mxu1 %vm5544_vm0, %v5545_v1 }
0x1099   : > { %5072 = vmatprep.subr.mxu1 %v5545_v1 }
0x109b   : > { %5070 = vmatmul.mubr.msk.f32.vlgmr.msra.gmra.mrb[44].mxu1 %vm542_vm2, %v3959_v53  ;;  %v4124_v53 = vld [vmem:[#allocation8 + $0x18] sm:$0xf] }
0x109c   : > { %5073 = vmatpush3.msra.mxu1 %v4049_v54  ;;  %5074 = vmatprep.mubr.msk.f32.mxu1 %vm5544_vm0, %v5545_v1 }
0x109d   : > { %5082 = vmatprep.subr.mxu1 %v5545_v1 }
0x10be   : > { %v2825_v55 = vpop.xlane.xlu0 %2824 }
0x10bf   : > { %5290 = vrcp.f32 %v2825_v55 }
0x10c0   : > { %5292 = vpow2.f32 %v3309_v0 }
0x10c9   : > { %v5291_v56 = vpop.eup %5290 }
0x10ca   : > { %v2827_v49 = vmul.f32 %v5291_v56, %v5287_v42  ;;  %v5293_v15 = vpop.eup %5292  ;;  %v3636_v42 = vld [vmem:[#allocation8 + $0x10] sm:$0xf] }
0x10cb   : > { %v3311_v16 = vsel %vm618_vm3, %v5293_v15, 0.0 }
0x10cc   : > { %5000 = vmatmul.mubr.msk.f32.vlgmr.msra.gmra.mrb[14].mxu0 %vm618_vm3, %v2827_v49 }
0x10cd   : > { %5004 = vmatprep.mubr.msk.f32.mxu0 %vm5544_vm0, %v5545_v1  ;;  %5003 = vmatpush3.msk.msra.mxu0 %vm711_vm4, %v2904_v63 }
0x10ce   : > { %5017 = vmatprep.subr.mxu0 %v5545_v1 }
0x1106   : > { %v2489_v61 = vpop.f32.mrb[2].mxu0 }
0x1107   : > { %v5109_v62 = vadd.f32 %v2489_v61, %v538_v60  ;;  %v4976_v18 = vpop.f32.mrb[3].mxu0 }
0x1109   : > { %2494 = vst.msk [vmem:[%s363_s29] sm:$0xff] %vm385_vm1, %v5109_v62 }
0x1166   : > { %v6190_v2 = vpop.f32.mrb[40].mxu1 }
0x1167   : > { %v5046_v3 = vpop.f32.mrb[41].mxu1 }
0x116a   : > { %v3788_v8 = vpop.f32.mrb[42].mxu1 }
0x116b   : > { %v3792_v4 = vmul.f32 0.5, %v3788_v8  ;;  %v5056_v5 = vpop.f32.mrb[43].mxu1 }
0x116d   : > { %v3793_v6 = vsel %vm618_vm3, %v3792_v4, -inf }
0x116e   : > { %3794 = vmax.xlane.f32.xlu1 %v3793_v6  ;;  %v4032_v7 = vpop.f32.mrb[44].mxu1 }
0x116f   : > { %v4036_v9 = vmul.f32 0.5, %v4032_v7  ;;  %v5071_v10 = vpop.f32.mrb[45].mxu1 }
0x1171   : > { %v4037_v11 = vsel %vm618_vm3, %v4036_v9, -inf }
0x1172   : > { %4038 = vmax.xlane.f32.xlu0 %v4037_v11 }
0x1176   : > { %3312 = vadd.xlane.f32.xlu0 %v3311_v16 }
0x118c   : > { %3316 = vrot.lane.b32.xlu0 %v5858_v13, %s5566_s18  ;;  %s5569_s18 = smov [#allocation10]  }
0x119f   : > { %v2900_v19 = vpop.f32.mrb[14].mxu0 }
0x11a0   : > { %v5001_v21 = vpop.f32.mrb[15].mxu0  ;;  %5005 = vmatmul.mubr.msk.f32.vlgmr.msra.gmra.mrb[12].mxu0 %vm542_vm2, %v2900_v19 }
0x11a1   : > { %5018 = vmatpush3.msk.msra.mxu0 %vm711_vm4, %v3148_v17  ;;  %5019 = vmatprep.mubr.msk.f32.mxu0 %vm5544_vm0, %v5545_v1 }
0x11a2   : > { %5027 = vmatprep.subr.mxu0 %v5545_v1 }
0x11a8   : > { %5020 = vmatmul.mubr.msk.f32.vlgmr.msra.gmra.mrb[12].mxu0 %vm542_vm2, %v6108_v12 }
0x11a9   : > { %5029 = vmatprep.mubr.msk.f32.mxu0 %vm5544_vm0, %v5545_v1 }
0x11fb   : > { %v3795_v24 = vpop.xlane.xlu1 %3794 }
0x11fc   : > { %v3796_v26 = vsub.f32 %v3792_v4, %v3795_v24 }
0x11fe   : > { %v3797_v29 = vmul.f32 1.442695, %v3796_v26 }
0x11ff   : > { %v4039_v27 = vpop.xlane.xlu0 %4038 }
0x1200   : > { %v4040_v28 = vsub.f32 %v4036_v9, %v4039_v27 }
0x1202   : > { %v4041_v30 = vmul.f32 1.442695, %v4040_v28 }
0x1203   : > { %v3313_v31 = vpop.xlane.xlu0 %3312 }
0x1204   : > { %5294 = vpow2.f32 %v4041_v30 }
0x1205   : > { %5296 = vrcp.f32 %v3313_v31 }
0x1206   : > { %5298 = vpow2.f32 %v3797_v29 }
0x1207   : > { %v3317_v32 = vpop.permute.xlu0 %3316 }
0x1208   : > { %5028 = vmatpush3.msra.mxu0 %v3317_v32 }
0x1209   : > { %5032 = vmatprep.subr.mxu0 %v5545_v1 }
0x120e   : > { %v5295_v12 = vpop.eup %5294 }
0x120f   : > { %v5297_v47 = vpop.eup %5296  ;;  %v4043_v33 = vsel %vm618_vm3, %v5295_v12, 0.0 }
0x1210   : > { %v5299_v34 = vpop.eup %5298  ;;  %v3315_v35 = vmul.f32 %v5297_v47, %v5293_v15  ;;  %4044 = vadd.xlane.f32.xlu0 %v4043_v33 }
0x1211   : > { %v3799_v57 = vsel %vm618_vm3, %v5299_v34, 0.0 }
0x1212   : > { %5030 = vmatmul.mubr.msk.f32.vlgmr.msra.gmra.mrb[16].mxu0 %vm618_vm3, %v3315_v35 }
0x1213   : > { %5034 = vmatprep.mubr.msk.f32.mxu0 %vm5544_vm0, %v5545_v1  ;;  %5033 = vmatpush3.msk.msra.mxu0 %vm711_vm4, %v3392_v36 }
0x1214   : > { %3800 = vadd.xlane.f32.xlu0 %v3799_v57  ;;  %5047 = vmatprep.subr.mxu0 %v5545_v1 }
0x122a   : > { %3804 = vrot.lane.b32.xlu0 %v5858_v13, %s5567_s4  ;;  %s5429_s4 = sshll.u32 %s5569_s18, 4  ;;  %s5430_s4 = int_to_ptr.vmem [resolvable:$false] %s5429_s4 }
0x122b   : > { %p5432_p4 = scmp.lt.s32.totalorder %s4467_s30, %s5430_s4 }
0x129d   : > { %v4045_v37 = vpop.xlane.xlu0 %4044 }
0x129e   : > { %5300 = vrcp.f32 %v4045_v37 }
0x12a1   : > { %v3801_v41 = vpop.xlane.xlu0 %3800 }
0x12a2   : > { %5302 = vrcp.f32 %v3801_v41 }
0x12a5   : > { %v3805_v44 = vpop.permute.xlu0 %3804 }
0x12a8   : > { %v5301_v39 = vpop.eup %5300 }
0x12a9   : > { %v4047_v40 = vmul.f32 %v5301_v39, %v5295_v12 }
0x12ab   : > { %5075 = vmatmul.mubr.msk.f32.vlgmr.msra.gmra.mrb[46].mxu1 %vm618_vm3, %v4047_v40 }
0x12ac   : > { %5083 = vmatpush3.xpose.msk.msra.mxu1 %vm542_vm2, %v4205_v22  ;;  %5084 = vmatprep.mubr.msk.f32.mxu1 %vm5544_vm0, %v5545_v1  ;;  %v5303_v20 = vpop.eup %5302 }
0x12ad   : > { %v3803_v14 = vmul.f32 %v5303_v20, %v5299_v34 }
0x12af   : > { %5085 = vmatmul.mubr.msk.f32.vlgmr.msra.gmra.mrb[48].mxu1 %vm542_vm2, %v4203_v23 }
0x12e5   : > { %v3388_v38 = vpop.f32.mrb[16].mxu0 }
0x12e6   : > { %v5031_v43 = vpop.f32.mrb[17].mxu0  ;;  %5035 = vmatmul.mubr.msk.f32.vlgmr.msra.gmra.mrb[12].mxu0 %vm542_vm2, %v3388_v38 }
0x12e7   : > { %5048 = vmatpush3.msk.msra.mxu0 %vm711_vm4, %v3636_v42  ;;  %5049 = vmatprep.mubr.msk.f32.mxu0 %vm5544_vm0, %v5545_v1 }
0x12e8   : > { %5057 = vmatprep.subr.mxu0 %v5545_v1 }
0x12ee   : > { %5050 = vmatmul.mubr.msk.f32.vlgmr.msra.gmra.mrb[12].mxu0 %vm542_vm2, %v6190_v2  ;;  %v4368_v2 = vld [vmem:[#allocation8 + $0x1c] sm:$0xf] }
0x12ef   : > { %5058 = vmatpush3.msra.mxu0 %v3805_v44  ;;  %5059 = vmatprep.mubr.msk.f32.mxu0 %vm5544_vm0, %v5545_v1 }
0x12f0   : > { %5062 = vmatprep.subr.mxu0 %v5545_v1 }
0x12f2   : > { %5060 = vmatmul.mubr.msk.f32.vlgmr.msra.gmra.mrb[18].mxu0 %vm618_vm3, %v3803_v14 }
0x12f3   : > { %5064 = vmatprep.mubr.msk.f32.mxu0 %vm5544_vm0, %v5545_v1  ;;  %5063 = vmatpush3.msk.msra.mxu0 %vm711_vm4, %v3880_v45 }
0x12f4   : > { %5077 = vmatprep.subr.mxu0 %v5545_v1 }
0x137e   : > { %v4120_v46 = vpop.f32.mrb[46].mxu1 }
0x137f   : > { %v5076_v48 = vpop.f32.mrb[47].mxu1 }
0x1382   : > { %v4276_v50 = vpop.f32.mrb[48].mxu1 }
0x1383   : > { %v4280_v51 = vmul.f32 0.5, %v4276_v50  ;;  %v5086_v52 = vpop.f32.mrb[49].mxu1 }
0x1385   : > { %v4281_v25 = vsel %vm618_vm3, %v4280_v51, -inf }
0x1386   : > { %4282 = vmax.xlane.f32.xlu0 %v4281_v25 }
0x13c5   : > { %v3876_v54 = vpop.f32.mrb[18].mxu0 }
0x13c6   : > { %v5061_v55 = vpop.f32.mrb[19].mxu0  ;;  %5065 = vmatmul.mubr.msk.f32.vlgmr.msra.gmra.mrb[12].mxu0 %vm542_vm2, %v3876_v54 }
0x13c7   : > { %5078 = vmatpush3.msk.msra.mxu0 %vm711_vm4, %v4124_v53  ;;  %5079 = vmatprep.mubr.msk.f32.mxu0 %vm5544_vm0, %v5545_v1 }
0x13c8   : > { %5087 = vmatprep.subr.mxu0 %v5545_v1 }
0x13ce   : > { %5080 = vmatmul.mubr.msk.f32.vlgmr.msra.gmra.mrb[12].mxu0 %vm542_vm2, %v4120_v46 }
0x13cf   : > { %5089 = vmatprep.mubr.msk.f32.mxu0 %vm5544_vm0, %v5545_v1 }
0x1413   : > { %v4283_v56 = vpop.xlane.xlu0 %4282 }
0x1414   : > { %v4284_v49 = vsub.f32 %v4280_v51, %v4283_v56 }
0x1416   : > { %v4285_v60 = vmul.f32 1.442695, %v4284_v49 }
0x1418   : > { %5304 = vpow2.f32 %v4285_v60 }
0x1422   : > { %v5305_v61 = vpop.eup %5304 }
0x1423   : > { %v4287_v62 = vsel %vm618_vm3, %v5305_v61, 0.0 }
0x1424   : > { %4288 = vadd.xlane.f32.xlu1 %v4287_v62 }
0x1435   : > { %4292 = vrot.lane.b32.xlu1 %v5858_v13, %s5568_s23  ;;  %s5431_s23 = scalar_lea.vmem %s5430_s4, 256 }
0x1436   : > { %p5433_p5 = scmp.lt.s32.totalorder %s5431_s23, %s5425_s12 }
0x1438   : > { %p5434_p3 = por %p5433_p5, %p5432_p4 }
0x143a   : > { %p5435_p7 = pnand %p5434_p3, %p5428_p10 }
0x14b1   : > { %v4289_v18 = vpop.xlane.xlu1 %4288 }
0x14b2   : > { %5306 = vrcp.f32 %v4289_v18 }
0x14b5   : > { %v4293_v63 = vpop.permute.xlu1 %4292 }
0x14b6   : > { %5088 = vmatpush3.msra.mxu0 %v4293_v63 }
0x14b7   : > { %5092 = vmatprep.subr.mxu0 %v5545_v1 }
0x14bc   : > { %v5307_v59 = vpop.eup %5306 }
0x14bd   : > { %v4291_v0 = vmul.f32 %v5307_v59, %v5305_v61 }
0x14bf   : > { %5090 = vmatmul.mubr.msk.f32.vlgmr.msra.gmra.mrb[20].mxu0 %vm618_vm3, %v4291_v0 }
0x14c0   : > { %5093 = vmatpush3.msk.msra.mxu0 %vm711_vm4, %v4368_v2  ;;  %5094 = vmatprep.mubr.msk.f32.mxu0 %vm5544_vm0, %v5545_v1 }
0x1592   : > { %v4364_v13 = vpop.f32.mrb[20].mxu0 }
0x1593   : > { %v5091_v3 = vpop.f32.mrb[21].mxu0  ;;  %5095 = vmatmul.mubr.msk.f32.vlgmr.msra.gmra.mrb[12].mxu0 %vm542_vm2, %v4364_v13 }
0x1594   : > { %5438 = shalt.err (!%p5435_p7)
}
0x1595   : > { %s5439_s26 = scalar_lea.hbm %s6260_s22, 128  ;;  %s5443_s20 = scalar_lea.hbm %s6342_s6, 256 }
0x1596   : > { %p5440_p1 = scmp.ne.s32.totalorder %s6260_s22, %s5439_s26  ;;  %p5444_p0 = scmp.lt.u32.totalorder %s6260_s22, %s6342_s6 }
0x1597   : > { %p5445_p9 = scmp.lt.u32.totalorder %s5443_s20, %s5439_s26  ;;  %p5447_p2 = scmp.lt.u32.totalorder %s5439_s26, %s6260_s22 }
0x1598   : > { %p5441_p8 = pnand %p5440_p1, %p6375_p13 }
0x1599   : > { %p5446_p12 = por %p5445_p9, %p5444_p0 }
0x159a   : > { %p5442_p11 = pneg %p5441_p8 }
0x159b   : > { %p5448_p6 = por %p5447_p2, %p5446_p12 }
0x159d   : > { %p5449_p10 = pnand %p5448_p6, %p5442_p11 }
0x159f   : > { %5452 = shalt.err (!%p5449_p10)
}
0x15a0   : > { %5151 = dma.vmem_to_hbm [thread:$0]  (%p6375_p13), %s4467_s30, 128, %s6260_s22, %s4448_s17  }
0x15a1   : > { %s6376_s10 = scalar_lea.vmem [#allocation5], %s5814_s2  ;;  %s370_s9 = scalar_lea.vmem [#allocation11], %s5814_s2 }
0x15a2   : > { %v5308_v1 = vld [vmem:[%s6376_s10] sm:$0xff]  ;;  %s4479_s12 = sshll.u32 %s370_s9, 4  ;;  %s6291_s23 = scalar_lea.hbm %s6343_s7, %s4725_s21  ;;  %s6293_s12 = int_to_ptr.vmem [resolvable:$true] %s4479_s12 }
0x15a3   : > { %v2495_v8 = vadd.f32 %v5308_v1, %v6179_v58  ;;  %s4453_s22 = scalar_lea.sflag [#allocation12], %s5811_s19  ;;  %s5453_s30 = scalar_lea.vmem %s6293_s12, 128 }
0x15a4   : > { %p5454_p4 = scmp.ne.s32.totalorder %s6293_s12, %s5453_s30  ;;  %s5570_s2 = smov [#allocation11]  }
0x15a5   : > { %s5457_s28 = sshll.u32 %s5570_s2, 4  ;;  %s5458_s28 = int_to_ptr.vmem [resolvable:$false] %s5457_s28 }
0x15a6   : > { %p5455_p5 = pnand %p5454_p4, %p6375_p13  ;;  %s5459_s17 = scalar_lea.vmem %s5458_s28, 256 }
0x15a7   : > { %p5460_p7 = scmp.lt.s32.totalorder %s6293_s12, %s5458_s28  ;;  %p5461_p1 = scmp.lt.s32.totalorder %s5459_s17, %s5453_s30 }
0x15a8   : > { %p5456_p3 = pneg %p5455_p5 }
0x15a9   : > { %p5462_p8 = por %p5461_p1, %p5460_p7 }
0x15ab   : > { %p5463_p11 = pnand %p5462_p8, %p5456_p3 }
0x1666   : > { %v4441_v4 = vpop.f32.mrb[12].mxu0 }
0x1667   : > { %v5110_v5 = vadd.f32 %v4441_v4, %v2495_v8  ;;  %v5096_v6 = vpop.f32.mrb[13].mxu0 }
0x1669   : > { %4446 = vst.msk [vmem:[%s370_s9] sm:$0xff] %vm385_vm1, %v5110_v5 }
0x166a   : > { %5466 = shalt.err (!%p5463_p11)
}
0x166b   : > { %s5467_s19 = scalar_lea.hbm %s6291_s23, 128  ;;  %s5471_s15 = scalar_lea.hbm %s6343_s7, 256 }
0x166c   : > { %p5468_p0 = scmp.ne.s32.totalorder %s6291_s23, %s5467_s19  ;;  %p5472_p2 = scmp.lt.u32.totalorder %s6291_s23, %s6343_s7 }
0x166d   : > { %p5473_p6 = scmp.lt.u32.totalorder %s5471_s15, %s5467_s19  ;;  %p5475_p4 = scmp.lt.u32.totalorder %s5467_s19, %s6291_s23 }
0x166e   : > { %p5469_p9 = pnand %p5468_p0, %p6375_p13 }
0x166f   : > { %p5474_p10 = por %p5473_p6, %p5472_p2 }
0x1670   : > { %p5470_p12 = pneg %p5469_p9 }
0x1671   : > { %p5476_p5 = por %p5475_p4, %p5474_p10 }
0x1673   : > { %p5477_p3 = pnand %p5476_p5, %p5470_p12 }
0x1675   : > { %5480 = shalt.err (!%p5477_p3)
}
0x1676   : > { %5152 = dma.vmem_to_hbm [thread:$0]  (%p6375_p13), %s6293_s12, 128, %s6291_s23, %s4453_s22  }
0x1677 PF: > { %s4491_s11 = sand.u32 1, %s5523_s24   ;;  %p6377_p7 = scmp.ne.s32.totalorder %s6357_s8, 0 }
0x1678   : > { %p6378_p1 = scmp.ge.s32.totalorder %s5535_s27, 2  ;;  %s4492_s29 = scalar_lea.sflag [#allocation4], %s4491_s11 }
0x167a   : > { %p5170_p8 = pnand %p6378_p1, %p6377_p7 }
0x167c   : > { %5514 = dma.done.wait (!%p5170_p8), %s4492_s29, 128  }
0x167d   : > { %5516 = vsyncadd (!%p5170_p8), %s4492_s29, 4294967168  ;;  %s4501_s10 = scalar_lea.sflag [#allocation12], %s4491_s11 }
0x167e   : > { %5518 = dma.done.wait (!%p5170_p8), %s4501_s10, 128  }
0x167f   : > { %5520 = vsyncadd (!%p5170_p8), %s4501_s10, 4294967168  ;;  %s6379_s16 = sld [smem:[#allocation19_spill]]  ;;  %s6380_s26 = sld [smem:[#allocation20_spill]] }
0x1680   : > { %p28_p13 = scmp.ge.s32.totalorder %s5721_s13, 4   ;;  %s6381_s24 = smov %s5527_s25 }
0x1681   : > { %s6383_s27 = smov %s5721_s13 }
0x1682   :  { %30 = sbr.rel (!%p28_p13) target bundleno = 13 (0xd), region = 127 }
0x1685   : > { %s6382_s25 = smov %s6379_s16 }
0x1689   :  { %4506 = vsyncpa [#allocation3], 1 }
0x168a   :  { %4508 = vsyncpa [#allocation3 + $0x1], 1 }
0x168b   :  { %4509 = vsyncpa [#allocation6], 1 }
0x168c   :  { %4511 = vsyncpa [#allocation6 + $0x1], 1 }
0x168d   :  { %4512 = vsyncpa [#allocation9], 1 }
0x168e   :  { %4513 = vsyncpa [#allocation4], 1 }
0x168f   :  { %4515 = vsyncpa [#allocation4 + $0x1], 1 }
0x1690   :  { %4516 = vsyncpa [#allocation12], 1 }
0x1691   :  { %4518 = vsyncpa [#allocation12 + $0x1], 1 }

</bundles_post_ra>
